<compile_context>
chip_gen: v6e
topology: v6e:2x2x1
jax: 0.10.0
libtpu: 0.0.40
codegen_flags: <defaults>
</compile_context>

<pallas_src>
import functools

import jax
import jax.numpy as jnp
from jax.experimental import pallas as pl
from jax.experimental.pallas import tpu as pltpu

LN_EPS = 1e-5


def _layernorm(x, gamma, beta):
    mu = jnp.mean(x, axis=-1, keepdims=True)
    var = jnp.mean((x - mu) ** 2, axis=-1, keepdims=True)
    return (x - mu) * jax.lax.rsqrt(var + LN_EPS) * gamma + beta


def _gelu_exact(x):
    # nn.GELU() default = exact erf formulation
    return 0.5 * x * (1.0 + jax.lax.erf(x * (1.0 / jnp.sqrt(2.0).astype(x.dtype))))


def fused_transformer_kernel(
    x_ref,
    ln1g_ref, ln1b_ref,
    wqkv_ref, bqkv_ref,
    wo_ref, bo_ref,
    ln2g_ref, ln2b_ref,
    w1_ref, b1_ref, w2_ref, b2_ref,
    o_ref,
    act_ref,
    *, seqs, seq, heads, dim_head, compute_dtype,
):
    """One grid step == one transformer layer applied to one batch block."""
    layer = pl.program_id(1)
    cd = compute_dtype
    approx_recip = jnp.dtype(cd) == jnp.dtype(jnp.bfloat16)
    inner = heads * dim_head
    m = seqs * seq

    # Layer 0 of this batch block: load the input into the resident VMEM slab.
    @pl.when(layer == 0)
    def _():
        act_ref[...] = x_ref[...]

    x = act_ref[...]                                            # (M, D) f32

    # ---------------- PreNorm + multi-head self-attention -----------------
    xn = _layernorm(x, ln1g_ref[0], ln1b_ref[0])                # (M, D) f32

    # Fused lane-dense QKV projection: one MXU pass, f32 accumulation.
    qkv = jnp.dot(xn.astype(cd), wqkv_ref[0],
                  preferred_element_type=jnp.float32) + bqkv_ref[0]  # (M, 3*inner)

    # Per-sequence, per-head attention (VanillaAttention: NO 1/sqrt(dh) scale).
    # Heads loop is static; score work per head is (BB, S, S) -- no cross-batch
    # mixing, no mask.  Softmax math stays f32 (unscaled logits can be large).
    ctx_heads = []
    for h in range(heads):
        qh = qkv[:, h * dim_head:(h + 1) * dim_head]
        kh = qkv[:, inner + h * dim_head: inner + (h + 1) * dim_head]
        vh = qkv[:, 2 * inner + h * dim_head: 2 * inner + (h + 1) * dim_head]
        q3 = qh.reshape(seqs, seq, dim_head)
        k3 = kh.reshape(seqs, seq, dim_head)
        v3 = vh.reshape(seqs, seq, dim_head)

        s = jnp.einsum("bqd,bkd->bqk", q3.astype(cd), k3.astype(cd),
                       preferred_element_type=jnp.float32)      # (BB, S, S)
        s = s - jnp.max(s, axis=-1, keepdims=True)
        e = jnp.exp(s)
        p = e * pl.reciprocal(jnp.sum(e, axis=-1, keepdims=True),
                              approx=approx_recip)
        c3 = jnp.einsum("bqk,bkd->bqd", p.astype(cd), v3.astype(cd),
                        preferred_element_type=jnp.float32)     # (BB, S, dh)
        ctx_heads.append(c3.reshape(m, dim_head))

    # One-time head->lane relayout, then a single full-depth output projection.
    ctx = jnp.concatenate(ctx_heads, axis=-1)                   # (M, inner)
    attn_out = jnp.dot(ctx.astype(cd), wo_ref[0],
                       preferred_element_type=jnp.float32) + bo_ref[0]

    x1 = x + attn_out

    # ----------------------- PreNorm + feed-forward ------------------------
    xn2 = _layernorm(x1, ln2g_ref[0], ln2b_ref[0])
    h1 = jnp.dot(xn2.astype(cd), w1_ref[0],
                 preferred_element_type=jnp.float32) + b1_ref[0]
    h1 = _gelu_exact(h1)                                        # f32 erf GELU
    ff = jnp.dot(h1.astype(cd), w2_ref[0],
                 preferred_element_type=jnp.float32) + b2_ref[0]

    x2 = x1 + ff
    act_ref[...] = x2                                           # carry to next layer

    @pl.when(layer == pl.num_programs(1) - 1)
    def _():
        o_ref[...] = x2.astype(o_ref.dtype)


def _vmem_limit_bytes():
    """~7/8 of physical VMEM (112 MiB on v5e/v6e, 56 MiB on v7x)."""
    try:
        cap = int(pltpu.get_tpu_info().vmem_capacity_bytes)
    except Exception:
        cap = 64 * 1024 * 1024      # safe fallback (v7x-sized)
    return int(cap * 7 // 8)


def _pick_batch_block(B, S, D, heads, dim_head, mlp_dim, weight_bytes, vmem_limit):
    """Largest divisor of B whose per-block working set fits comfortably."""
    inner = heads * dim_head
    w_bytes = 2 * weight_bytes * (D * 3 * inner + inner * D
                                  + D * mlp_dim + mlp_dim * D)   # double-buffered
    budget = max(vmem_limit - w_bytes, vmem_limit // 3)

    def block_bytes(bb):
        m = bb * S
        return 4 * (5 * m * D            # act slab + double-buffered x/out blocks
                    + m * 3 * inner      # fused qkv
                    + m * inner          # concat ctx
                    + 3 * bb * S * S     # one head's scores / exp / probs
                    + m * mlp_dim)       # FFN hidden

    candidates = [bb for bb in range(B, 0, -1)
                  if B % bb == 0 and (bb == B or (bb * S) % 8 == 0)]
    for bb in candidates:
        if block_bytes(bb) <= budget // 2:
            return bb
    return candidates[-1]


def transformer_forward(x, layer_params, *, heads, dim_head,
                        compute_dtype=jnp.float32, batch_block=None):
    """x: (B, S, D) float32.  Applies all layers in one fused pallas_call."""
    B, S, D = x.shape
    N = B * S
    L = len(layer_params)
    inner = heads * dim_head

    wdt = jnp.dtype(compute_dtype)      # matmul-weight streaming dtype
    vmem_limit = _vmem_limit_bytes()
    if batch_block is None:
        batch_block = _pick_batch_block(B, S, D, heads, dim_head,
                                        layer_params[0]["w1"].shape[1],
                                        wdt.itemsize, vmem_limit)
    BB = batch_block
    n_bb = B // BB
    M = BB * S

    # --- wrapper-side (free) restructuring of the parameters ----------------
    def stack(name, dtype=jnp.float32):                 # (r, c) -> (L, r, c)
        return jnp.stack([p[name] for p in layer_params]).astype(dtype)

    # Fused QKV weight (L, D, 3*inner) and bias (L, 1, 3*inner); matmul weights
    # streamed in compute_dtype, biases / LN params kept f32.
    wqkv = jnp.stack(
        [jnp.concatenate([p["wq"], p["wk"], p["wv"]], axis=1) for p in layer_params]
    ).astype(wdt)
    bqkv = jnp.stack(
        [jnp.concatenate([p["bq"], p["bk"], p["bv"]], axis=1) for p in layer_params]
    ).astype(jnp.float32)

    mlp_dim = layer_params[0]["w1"].shape[1]

    stacked = [
        stack("ln1_g"), stack("ln1_b"),
        wqkv, bqkv,
        stack("wo", wdt), stack("bo"),
        stack("ln2_g"), stack("ln2_b"),
        stack("w1", wdt), stack("b1"),
        stack("w2", wdt), stack("b2"),
    ]

    def layer_spec(arr):
        # TODO(synk): on v5e, bump pipeline_mode=pl.Buffered(3) on the big
        # weight streams if profiling shows exposed weight DMA.
        return pl.BlockSpec((1,) + arr.shape[1:], lambda b, l: (l, 0, 0))

    in_specs = ([pl.BlockSpec((M, D), lambda b, l: (b, 0))]
                + [layer_spec(a) for a in stacked])

    kernel = functools.partial(
        fused_transformer_kernel,
        seqs=BB, seq=S, heads=heads, dim_head=dim_head,
        compute_dtype=compute_dtype)

    out2d = pl.pallas_call(
        kernel,
        out_shape=jax.ShapeDtypeStruct((N, D), x.dtype),
        grid=(n_bb, L),
        in_specs=in_specs,
        out_specs=pl.BlockSpec((M, D), lambda b, l: (b, 0)),
        scratch_shapes=[pltpu.VMEM((M, D), jnp.float32)],
        compiler_params=pltpu.CompilerParams(
            # Batch blocks are independent (megacore-shardable on v7x);
            # the layer axis carries the activation scratch -> sequential.
            dimension_semantics=("parallel", "arbitrary"),
            vmem_limit_bytes=vmem_limit,
        ),
    )(x.reshape(N, D), *stacked)

    return out2d.reshape(B, S, D)


# ------------------------- pure-JAX reference ------------------------------
def reference_forward(x, layer_params, *, heads, dim_head,
                      compute_dtype=jnp.float32):
    cd = compute_dtype
    B, S, D = x.shape
    dh = dim_head
    for p in layer_params:
        xn = _layernorm(x, p["ln1_g"][0], p["ln1_b"][0])
        q = jnp.einsum("bsd,de->bse", xn.astype(cd), p["wq"].astype(cd),
                       preferred_element_type=jnp.float32) + p["bq"][0]
        k = jnp.einsum("bsd,de->bse", xn.astype(cd), p["wk"].astype(cd),
                       preferred_element_type=jnp.float32) + p["bk"][0]
        v = jnp.einsum("bsd,de->bse", xn.astype(cd), p["wv"].astype(cd),
                       preferred_element_type=jnp.float32) + p["bv"][0]
        qh = q.reshape(B, S, heads, dh).transpose(0, 2, 1, 3)
        kh = k.reshape(B, S, heads, dh).transpose(0, 2, 1, 3)
        vh = v.reshape(B, S, heads, dh).transpose(0, 2, 1, 3)
        s = jnp.einsum("bhqd,bhkd->bhqk", qh.astype(cd), kh.astype(cd),
                       preferred_element_type=jnp.float32)
        s = s - jnp.max(s, axis=-1, keepdims=True)
        e = jnp.exp(s)
        p_att = e / jnp.sum(e, axis=-1, keepdims=True)
        o = jnp.einsum("bhqk,bhkd->bhqd", p_att.astype(cd), vh.astype(cd),
                       preferred_element_type=jnp.float32)
        concat = o.transpose(0, 2, 1, 3).reshape(B, S, heads * dh)
        attn_out = jnp.einsum("bsd,de->bse", concat.astype(cd), p["wo"].astype(cd),
                              preferred_element_type=jnp.float32) + p["bo"][0]
        x = x + attn_out
        xn2 = _layernorm(x, p["ln2_g"][0], p["ln2_b"][0])
        h1 = _gelu_exact(
            jnp.einsum("bsd,df->bsf", xn2.astype(cd), p["w1"].astype(cd),
                       preferred_element_type=jnp.float32) + p["b1"][0])
        x = x + jnp.einsum("bsf,fd->bsd", h1.astype(cd), p["w2"].astype(cd),
                           preferred_element_type=jnp.float32) + p["b2"][0]
    return x


def init_params(key, depth, dim, heads, dim_head, mlp_dim):
    inner = heads * dim_head
    layer_params = []
    for _ in range(depth):
        keys = jax.random.split(key, 9)
        key = keys[0]

        def u(k, shape, bound):
            return jax.random.uniform(k, shape, jnp.float32, -bound, bound)

        b_attn = 1.0 / (dim ** 0.5)
        b_out = 1.0 / (inner ** 0.5)
        b1 = 1.0 / (dim ** 0.5)
        b2 = 1.0 / (mlp_dim ** 0.5)
        params = {
            "ln1_g": jnp.ones((1, dim), jnp.float32),
            "ln1_b": jnp.zeros((1, dim), jnp.float32),
            # weights stored (in, out) so the math is x @ W + b
            "wq": u(keys[1], (dim, inner), b_attn),
            "bq": u(keys[2], (1, inner), b_attn),
            "wk": u(keys[3], (dim, inner), b_attn),
            "bk": u(keys[4], (1, inner), b_attn),
            "wv": u(keys[5], (dim, inner), b_attn),
            "bv": u(keys[6], (1, inner), b_attn),
            "wo": u(keys[7], (inner, dim), b_out),
            "bo": u(keys[8], (1, dim), b_out),
            "ln2_g": jnp.ones((1, dim), jnp.float32),
            "ln2_b": jnp.zeros((1, dim), jnp.float32),
            "w1": u(jax.random.fold_in(key, 1), (dim, mlp_dim), b1),
            "b1": u(jax.random.fold_in(key, 2), (1, mlp_dim), b1),
            "w2": u(jax.random.fold_in(key, 3), (mlp_dim, dim), b2),
            "b2": u(jax.random.fold_in(key, 4), (1, dim), b2),
        }
        layer_params.append(params)
    return layer_params


if __name__ == "__main__":
    # Small shapes consistent with the module's forward: x is (B, S, dim).
    B, S = 2, 8
    dim, depth, heads, dim_head, mlp_dim = 32, 2, 4, 8, 64

    key = jax.random.PRNGKey(0)
    kx, kp = jax.random.split(key)
    x = jax.random.normal(kx, (B, S, dim), jnp.float32)
    layer_params = init_params(kp, depth, dim, heads, dim_head, mlp_dim)

    # f32 path: faithful semantics of the PyTorch module (tight tolerance).
    out_f32 = transformer_forward(x, layer_params, heads=heads, dim_head=dim_head,
                                  compute_dtype=jnp.float32)
    out_f32 = jax.block_until_ready(out_f32)
    ref_f32 = reference_forward(x, layer_params, heads=heads, dim_head=dim_head,
                                compute_dtype=jnp.float32)
    assert out_f32.shape == (B, S, dim)
    assert jnp.allclose(out_f32, ref_f32, atol=1e-4, rtol=1e-4), "f32 mismatch"

    # bf16-MXU path (recommended on v6e/v7x): bf16 weight streaming + bf16
    # matmul inputs with f32 accumulation; compared against a reference that
    # applies the same casts at every matmul input.
    out_bf16 = transformer_forward(x, layer_params, heads=heads, dim_head=dim_head,
                                   compute_dtype=jnp.bfloat16)
    out_bf16 = jax.block_until_ready(out_bf16)
    ref_bf16 = reference_forward(x, layer_params, heads=heads, dim_head=dim_head,
                                 compute_dtype=jnp.bfloat16)
    assert jnp.allclose(out_bf16, ref_bf16, atol=2e-2, rtol=2e-2), "bf16 mismatch"

    print("KERNEL_OK")
</pallas_src>

<mosaic_0001>
module attributes {stable_mosaic.version = 11 : i64} {
  func.func @fused_transformer_kernel(%arg0: i32, %arg1: i32, %arg2: memref<16x32xf32, #tpu.memory_space<vmem>>, %arg3: memref<1x1x32xf32, #tpu.memory_space<vmem>>, %arg4: memref<1x1x32xf32, #tpu.memory_space<vmem>>, %arg5: memref<1x32x96xf32, #tpu.memory_space<vmem>>, %arg6: memref<1x1x96xf32, #tpu.memory_space<vmem>>, %arg7: memref<1x32x32xf32, #tpu.memory_space<vmem>>, %arg8: memref<1x1x32xf32, #tpu.memory_space<vmem>>, %arg9: memref<1x1x32xf32, #tpu.memory_space<vmem>>, %arg10: memref<1x1x32xf32, #tpu.memory_space<vmem>>, %arg11: memref<1x32x64xf32, #tpu.memory_space<vmem>>, %arg12: memref<1x1x64xf32, #tpu.memory_space<vmem>>, %arg13: memref<1x64x32xf32, #tpu.memory_space<vmem>>, %arg14: memref<1x1x32xf32, #tpu.memory_space<vmem>>, %arg15: memref<16x32xf32, #tpu.memory_space<vmem>>, %arg16: memref<16x32xf32, #tpu.memory_space<vmem>>) attributes {dimension_semantics = [#tpu.dimension_semantics<parallel>, #tpu.dimension_semantics<arbitrary>], iteration_bounds = array<i64: 1, 2>, scalar_prefetch = 0 : i64, scratch_operands = 1 : i64, tpu.core_type = #tpu.core_type<tc>, window_params = [{transform_indices = @transform_0, window_bounds = array<i64: 16, 32>}, {transform_indices = @transform_1, window_bounds = array<i64: 1, 1, 32>}, {transform_indices = @transform_2, window_bounds = array<i64: 1, 1, 32>}, {transform_indices = @transform_3, window_bounds = array<i64: 1, 32, 96>}, {transform_indices = @transform_4, window_bounds = array<i64: 1, 1, 96>}, {transform_indices = @transform_5, window_bounds = array<i64: 1, 32, 32>}, {transform_indices = @transform_6, window_bounds = array<i64: 1, 1, 32>}, {transform_indices = @transform_7, window_bounds = array<i64: 1, 1, 32>}, {transform_indices = @transform_8, window_bounds = array<i64: 1, 1, 32>}, {transform_indices = @transform_9, window_bounds = array<i64: 1, 32, 64>}, {transform_indices = @transform_10, window_bounds = array<i64: 1, 1, 64>}, {transform_indices = @transform_11, window_bounds = array<i64: 1, 64, 32>}, {transform_indices = @transform_12, window_bounds = array<i64: 1, 1, 32>}, {transform_indices = @transform_13, window_bounds = array<i64: 16, 32>}]} {
    %c0_i32 = arith.constant 0 : i32
    %0 = arith.cmpi eq, %arg1, %c0_i32 : i32
    %1 = arith.extui %0 : i1 to i32
    %c0_i32_0 = arith.constant 0 : i32
    %2 = arith.cmpi ne, %1, %c0_i32_0 : i32
    scf.if %2 {
      %c0_74 = arith.constant 0 : index
      %c0_75 = arith.constant 0 : index
      %177 = vector.load %arg2[%c0_74, %c0_75] : memref<16x32xf32, #tpu.memory_space<vmem>>, vector<16x32xf32>
      %c0_76 = arith.constant 0 : index
      %c0_77 = arith.constant 0 : index
      %178 = vector.load %arg16[%c0_76, %c0_77] : memref<16x32xf32, #tpu.memory_space<vmem>>, vector<16x32xf32>
      tpu.vector_store %arg16[%c0_76, %c0_77], %177 {strides = array<i32>} : memref<16x32xf32, #tpu.memory_space<vmem>>, vector<16x32xf32>,
    } else {
    }
    %c0 = arith.constant 0 : index
    %c0_1 = arith.constant 0 : index
    %3 = vector.load %arg16[%c0, %c0_1] : memref<16x32xf32, #tpu.memory_space<vmem>>, vector<16x32xf32>
    %c0_2 = arith.constant 0 : index
    %c0_3 = arith.constant 0 : index
    %c0_4 = arith.constant 0 : index
    %4 = vector.load %arg3[%c0_2, %c0_3, %c0_4] : memref<1x1x32xf32, #tpu.memory_space<vmem>>, vector<1x1x32xf32>
    %5 = vector.shape_cast %4 : vector<1x1x32xf32> to vector<1x32xf32>
    %c0_5 = arith.constant 0 : index
    %c0_6 = arith.constant 0 : index
    %c0_7 = arith.constant 0 : index
    %6 = vector.load %arg4[%c0_5, %c0_6, %c0_7] : memref<1x1x32xf32, #tpu.memory_space<vmem>>, vector<1x1x32xf32>
    %7 = vector.shape_cast %6 : vector<1x1x32xf32> to vector<1x32xf32>
    %cst = arith.constant dense<0.000000e+00> : vector<16xf32>
    %8 = vector.multi_reduction <add>, %3, %cst [1] : vector<16x32xf32> to vector<16xf32>
    %9 = vector.shape_cast %8 : vector<16xf32> to vector<16x1xf32>
    %cst_8 = arith.constant 3.200000e+01 : f32
    %10 = vector.broadcast %cst_8 : f32 to vector<16x1xf32>
    %11 = arith.divf %9, %10 : vector<16x1xf32>
    %12 = vector.broadcast %11 : vector<16x1xf32> to vector<16x32xf32>
    %13 = arith.subf %3, %12 : vector<16x32xf32>
    %14 = arith.mulf %13, %13 : vector<16x32xf32>
    %cst_9 = arith.constant dense<0.000000e+00> : vector<16xf32>
    %15 = vector.multi_reduction <add>, %14, %cst_9 [1] : vector<16x32xf32> to vector<16xf32>
    %16 = vector.shape_cast %15 : vector<16xf32> to vector<16x1xf32>
    %cst_10 = arith.constant 3.200000e+01 : f32
    %17 = vector.broadcast %cst_10 : f32 to vector<16x1xf32>
    %18 = arith.divf %16, %17 : vector<16x1xf32>
    %19 = vector.broadcast %11 : vector<16x1xf32> to vector<16x32xf32>
    %20 = arith.subf %3, %19 : vector<16x32xf32>
    %cst_11 = arith.constant 9.99999974E-6 : f32
    %21 = vector.broadcast %cst_11 : f32 to vector<16x1xf32>
    %22 = arith.addf %18, %21 : vector<16x1xf32>
    %23 = math.rsqrt %22 : vector<16x1xf32>
    %24 = vector.broadcast %23 : vector<16x1xf32> to vector<16x32xf32>
    %25 = arith.mulf %20, %24 : vector<16x32xf32>
    %26 = vector.broadcast %5 : vector<1x32xf32> to vector<16x32xf32>
    %27 = arith.mulf %25, %26 : vector<16x32xf32>
    %28 = vector.broadcast %7 : vector<1x32xf32> to vector<16x32xf32>
    %29 = arith.addf %27, %28 : vector<16x32xf32>
    %c0_12 = arith.constant 0 : index
    %c0_13 = arith.constant 0 : index
    %c0_14 = arith.constant 0 : index
    %30 = vector.load %arg5[%c0_12, %c0_13, %c0_14] : memref<1x32x96xf32, #tpu.memory_space<vmem>>, vector<1x32x96xf32>
    %31 = vector.shape_cast %30 : vector<1x32x96xf32> to vector<32x96xf32>
    %cst_15 = arith.constant dense<0.000000e+00> : vector<16x96xf32>
    %32 = tpu.matmul %29, %31, %cst_15 {dimension_numbers = #tpu.dot_dimension_numbers<[1], [0], [0], [1], [0, 0, 1, 1], [], []>} : vector<16x32xf32>, vector<32x96xf32>, vector<16x96xf32> -> vector<16x96xf32>
    %c0_16 = arith.constant 0 : index
    %c0_17 = arith.constant 0 : index
    %c0_18 = arith.constant 0 : index
    %33 = vector.load %arg6[%c0_16, %c0_17, %c0_18] : memref<1x1x96xf32, #tpu.memory_space<vmem>>, vector<1x1x96xf32>
    %34 = vector.shape_cast %33 : vector<1x1x96xf32> to vector<1x96xf32>
    %35 = vector.broadcast %34 : vector<1x96xf32> to vector<16x96xf32>
    %36 = arith.addf %32, %35 : vector<16x96xf32>
    %37 = vector.extract_strided_slice %36 {offsets = [0, 0], sizes = [16, 8], strides = [1, 1]} : vector<16x96xf32> to vector<16x8xf32>
    %38 = vector.extract_strided_slice %36 {offsets = [0, 32], sizes = [16, 8], strides = [1, 1]} : vector<16x96xf32> to vector<16x8xf32>
    %39 = vector.extract_strided_slice %36 {offsets = [0, 64], sizes = [16, 8], strides = [1, 1]} : vector<16x96xf32> to vector<16x8xf32>
    %40 = vector.shape_cast %37 : vector<16x8xf32> to vector<2x8x8xf32>
    %41 = vector.shape_cast %38 : vector<16x8xf32> to vector<2x8x8xf32>
    %42 = vector.shape_cast %39 : vector<16x8xf32> to vector<2x8x8xf32>
    "tpu.trace_start"() <{level = 10 : i32, message = "bqd,bkd->bqk"}> : () -> ()
    %cst_19 = arith.constant dense<0.000000e+00> : vector<2x8x8xf32>
    %43 = tpu.matmul %40, %41, %cst_19 {dimension_numbers = #tpu.dot_dimension_numbers<[2], [2], [1], [1], [0, 0, 0, 1, 1, 1], [0], [0]>} : vector<2x8x8xf32>, vector<2x8x8xf32>, vector<2x8x8xf32> -> vector<2x8x8xf32>
    "tpu.trace_stop"() : () -> ()
    %cst_20 = arith.constant dense<0xFF800000> : vector<2x8xf32>
    %44 = vector.multi_reduction <maximumf>, %43, %cst_20 [2] : vector<2x8x8xf32> to vector<2x8xf32>
    %45 = vector.shape_cast %44 : vector<2x8xf32> to vector<2x8x1xf32>
    %46 = vector.broadcast %45 : vector<2x8x1xf32> to vector<2x8x8xf32>
    %47 = arith.subf %43, %46 : vector<2x8x8xf32>
    %48 = math.exp %47 : vector<2x8x8xf32>
    %cst_21 = arith.constant dense<0.000000e+00> : vector<2x8xf32>
    %49 = vector.multi_reduction <add>, %48, %cst_21 [2] : vector<2x8x8xf32> to vector<2x8xf32>
    %50 = vector.shape_cast %49 : vector<2x8xf32> to vector<2x8x1xf32>
    %51 = tpu.reciprocal %50 : vector<2x8x1xf32> -> vector<2x8x1xf32>
    %52 = vector.broadcast %51 : vector<2x8x1xf32> to vector<2x8x8xf32>
    %53 = arith.mulf %48, %52 : vector<2x8x8xf32>
    "tpu.trace_start"() <{level = 10 : i32, message = "bqk,bkd->bqd"}> : () -> ()
    %cst_22 = arith.constant dense<0.000000e+00> : vector<2x8x8xf32>
    %54 = tpu.matmul %53, %42, %cst_22 {dimension_numbers = #tpu.dot_dimension_numbers<[2], [1], [1], [2], [0, 0, 0, 1, 1, 2], [0], [0]>} : vector<2x8x8xf32>, vector<2x8x8xf32>, vector<2x8x8xf32> -> vector<2x8x8xf32>
    "tpu.trace_stop"() : () -> ()
    %55 = vector.shape_cast %54 : vector<2x8x8xf32> to vector<16x8xf32>
    %56 = vector.extract_strided_slice %36 {offsets = [0, 8], sizes = [16, 8], strides = [1, 1]} : vector<16x96xf32> to vector<16x8xf32>
    %57 = vector.extract_strided_slice %36 {offsets = [0, 40], sizes = [16, 8], strides = [1, 1]} : vector<16x96xf32> to vector<16x8xf32>
    %58 = vector.extract_strided_slice %36 {offsets = [0, 72], sizes = [16, 8], strides = [1, 1]} : vector<16x96xf32> to vector<16x8xf32>
    %59 = vector.shape_cast %56 : vector<16x8xf32> to vector<2x8x8xf32>
    %60 = vector.shape_cast %57 : vector<16x8xf32> to vector<2x8x8xf32>
    %61 = vector.shape_cast %58 : vector<16x8xf32> to vector<2x8x8xf32>
    "tpu.trace_start"() <{level = 10 : i32, message = "bqd,bkd->bqk"}> : () -> ()
    %cst_23 = arith.constant dense<0.000000e+00> : vector<2x8x8xf32>
    %62 = tpu.matmul %59, %60, %cst_23 {dimension_numbers = #tpu.dot_dimension_numbers<[2], [2], [1], [1], [0, 0, 0, 1, 1, 1], [0], [0]>} : vector<2x8x8xf32>, vector<2x8x8xf32>, vector<2x8x8xf32> -> vector<2x8x8xf32>
    "tpu.trace_stop"() : () -> ()
    %cst_24 = arith.constant dense<0xFF800000> : vector<2x8xf32>
    %63 = vector.multi_reduction <maximumf>, %62, %cst_24 [2] : vector<2x8x8xf32> to vector<2x8xf32>
    %64 = vector.shape_cast %63 : vector<2x8xf32> to vector<2x8x1xf32>
    %65 = vector.broadcast %64 : vector<2x8x1xf32> to vector<2x8x8xf32>
    %66 = arith.subf %62, %65 : vector<2x8x8xf32>
    %67 = math.exp %66 : vector<2x8x8xf32>
    %cst_25 = arith.constant dense<0.000000e+00> : vector<2x8xf32>
    %68 = vector.multi_reduction <add>, %67, %cst_25 [2] : vector<2x8x8xf32> to vector<2x8xf32>
    %69 = vector.shape_cast %68 : vector<2x8xf32> to vector<2x8x1xf32>
    %70 = tpu.reciprocal %69 : vector<2x8x1xf32> -> vector<2x8x1xf32>
    %71 = vector.broadcast %70 : vector<2x8x1xf32> to vector<2x8x8xf32>
    %72 = arith.mulf %67, %71 : vector<2x8x8xf32>
    "tpu.trace_start"() <{level = 10 : i32, message = "bqk,bkd->bqd"}> : () -> ()
    %cst_26 = arith.constant dense<0.000000e+00> : vector<2x8x8xf32>
    %73 = tpu.matmul %72, %61, %cst_26 {dimension_numbers = #tpu.dot_dimension_numbers<[2], [1], [1], [2], [0, 0, 0, 1, 1, 2], [0], [0]>} : vector<2x8x8xf32>, vector<2x8x8xf32>, vector<2x8x8xf32> -> vector<2x8x8xf32>
    "tpu.trace_stop"() : () -> ()
    %74 = vector.shape_cast %73 : vector<2x8x8xf32> to vector<16x8xf32>
    %75 = vector.extract_strided_slice %36 {offsets = [0, 16], sizes = [16, 8], strides = [1, 1]} : vector<16x96xf32> to vector<16x8xf32>
    %76 = vector.extract_strided_slice %36 {offsets = [0, 48], sizes = [16, 8], strides = [1, 1]} : vector<16x96xf32> to vector<16x8xf32>
    %77 = vector.extract_strided_slice %36 {offsets = [0, 80], sizes = [16, 8], strides = [1, 1]} : vector<16x96xf32> to vector<16x8xf32>
    %78 = vector.shape_cast %75 : vector<16x8xf32> to vector<2x8x8xf32>
    %79 = vector.shape_cast %76 : vector<16x8xf32> to vector<2x8x8xf32>
    %80 = vector.shape_cast %77 : vector<16x8xf32> to vector<2x8x8xf32>
    "tpu.trace_start"() <{level = 10 : i32, message = "bqd,bkd->bqk"}> : () -> ()
    %cst_27 = arith.constant dense<0.000000e+00> : vector<2x8x8xf32>
    %81 = tpu.matmul %78, %79, %cst_27 {dimension_numbers = #tpu.dot_dimension_numbers<[2], [2], [1], [1], [0, 0, 0, 1, 1, 1], [0], [0]>} : vector<2x8x8xf32>, vector<2x8x8xf32>, vector<2x8x8xf32> -> vector<2x8x8xf32>
    "tpu.trace_stop"() : () -> ()
    %cst_28 = arith.constant dense<0xFF800000> : vector<2x8xf32>
    %82 = vector.multi_reduction <maximumf>, %81, %cst_28 [2] : vector<2x8x8xf32> to vector<2x8xf32>
    %83 = vector.shape_cast %82 : vector<2x8xf32> to vector<2x8x1xf32>
    %84 = vector.broadcast %83 : vector<2x8x1xf32> to vector<2x8x8xf32>
    %85 = arith.subf %81, %84 : vector<2x8x8xf32>
    %86 = math.exp %85 : vector<2x8x8xf32>
    %cst_29 = arith.constant dense<0.000000e+00> : vector<2x8xf32>
    %87 = vector.multi_reduction <add>, %86, %cst_29 [2] : vector<2x8x8xf32> to vector<2x8xf32>
    %88 = vector.shape_cast %87 : vector<2x8xf32> to vector<2x8x1xf32>
    %89 = tpu.reciprocal %88 : vector<2x8x1xf32> -> vector<2x8x1xf32>
    %90 = vector.broadcast %89 : vector<2x8x1xf32> to vector<2x8x8xf32>
    %91 = arith.mulf %86, %90 : vector<2x8x8xf32>
    "tpu.trace_start"() <{level = 10 : i32, message = "bqk,bkd->bqd"}> : () -> ()
    %cst_30 = arith.constant dense<0.000000e+00> : vector<2x8x8xf32>
    %92 = tpu.matmul %91, %80, %cst_30 {dimension_numbers = #tpu.dot_dimension_numbers<[2], [1], [1], [2], [0, 0, 0, 1, 1, 2], [0], [0]>} : vector<2x8x8xf32>, vector<2x8x8xf32>, vector<2x8x8xf32> -> vector<2x8x8xf32>
    "tpu.trace_stop"() : () -> ()
    %93 = vector.shape_cast %92 : vector<2x8x8xf32> to vector<16x8xf32>
    %94 = vector.extract_strided_slice %36 {offsets = [0, 24], sizes = [16, 8], strides = [1, 1]} : vector<16x96xf32> to vector<16x8xf32>
    %95 = vector.extract_strided_slice %36 {offsets = [0, 56], sizes = [16, 8], strides = [1, 1]} : vector<16x96xf32> to vector<16x8xf32>
    %96 = vector.extract_strided_slice %36 {offsets = [0, 88], sizes = [16, 8], strides = [1, 1]} : vector<16x96xf32> to vector<16x8xf32>
    %97 = vector.shape_cast %94 : vector<16x8xf32> to vector<2x8x8xf32>
    %98 = vector.shape_cast %95 : vector<16x8xf32> to vector<2x8x8xf32>
    %99 = vector.shape_cast %96 : vector<16x8xf32> to vector<2x8x8xf32>
    "tpu.trace_start"() <{level = 10 : i32, message = "bqd,bkd->bqk"}> : () -> ()
    %cst_31 = arith.constant dense<0.000000e+00> : vector<2x8x8xf32>
    %100 = tpu.matmul %97, %98, %cst_31 {dimension_numbers = #tpu.dot_dimension_numbers<[2], [2], [1], [1], [0, 0, 0, 1, 1, 1], [0], [0]>} : vector<2x8x8xf32>, vector<2x8x8xf32>, vector<2x8x8xf32> -> vector<2x8x8xf32>
    "tpu.trace_stop"() : () -> ()
    %cst_32 = arith.constant dense<0xFF800000> : vector<2x8xf32>
    %101 = vector.multi_reduction <maximumf>, %100, %cst_32 [2] : vector<2x8x8xf32> to vector<2x8xf32>
    %102 = vector.shape_cast %101 : vector<2x8xf32> to vector<2x8x1xf32>
    %103 = vector.broadcast %102 : vector<2x8x1xf32> to vector<2x8x8xf32>
    %104 = arith.subf %100, %103 : vector<2x8x8xf32>
    %105 = math.exp %104 : vector<2x8x8xf32>
    %cst_33 = arith.constant dense<0.000000e+00> : vector<2x8xf32>
    %106 = vector.multi_reduction <add>, %105, %cst_33 [2] : vector<2x8x8xf32> to vector<2x8xf32>
    %107 = vector.shape_cast %106 : vector<2x8xf32> to vector<2x8x1xf32>
    %108 = tpu.reciprocal %107 : vector<2x8x1xf32> -> vector<2x8x1xf32>
    %109 = vector.broadcast %108 : vector<2x8x1xf32> to vector<2x8x8xf32>
    %110 = arith.mulf %105, %109 : vector<2x8x8xf32>
    "tpu.trace_start"() <{level = 10 : i32, message = "bqk,bkd->bqd"}> : () -> ()
    %cst_34 = arith.constant dense<0.000000e+00> : vector<2x8x8xf32>
    %111 = tpu.matmul %110, %99, %cst_34 {dimension_numbers = #tpu.dot_dimension_numbers<[2], [1], [1], [2], [0, 0, 0, 1, 1, 2], [0], [0]>} : vector<2x8x8xf32>, vector<2x8x8xf32>, vector<2x8x8xf32> -> vector<2x8x8xf32>
    "tpu.trace_stop"() : () -> ()
    %112 = vector.shape_cast %111 : vector<2x8x8xf32> to vector<16x8xf32>
    %113 = tpu.concatenate %55, %74, %93, %112 in 1 : vector<16x8xf32>, vector<16x8xf32>, vector<16x8xf32>, vector<16x8xf32> -> vector<16x32xf32>
    %c0_35 = arith.constant 0 : index
    %c0_36 = arith.constant 0 : index
    %c0_37 = arith.constant 0 : index
    %114 = vector.load %arg7[%c0_35, %c0_36, %c0_37] : memref<1x32x32xf32, #tpu.memory_space<vmem>>, vector<1x32x32xf32>
    %115 = vector.shape_cast %114 : vector<1x32x32xf32> to vector<32x32xf32>
    %cst_38 = arith.constant dense<0.000000e+00> : vector<16x32xf32>
    %116 = tpu.matmul %113, %115, %cst_38 {dimension_numbers = #tpu.dot_dimension_numbers<[1], [0], [0], [1], [0, 0, 1, 1], [], []>} : vector<16x32xf32>, vector<32x32xf32>, vector<16x32xf32> -> vector<16x32xf32>
    %c0_39 = arith.constant 0 : index
    %c0_40 = arith.constant 0 : index
    %c0_41 = arith.constant 0 : index
    %117 = vector.load %arg8[%c0_39, %c0_40, %c0_41] : memref<1x1x32xf32, #tpu.memory_space<vmem>>, vector<1x1x32xf32>
    %118 = vector.shape_cast %117 : vector<1x1x32xf32> to vector<1x32xf32>
    %119 = vector.broadcast %118 : vector<1x32xf32> to vector<16x32xf32>
    %120 = arith.addf %116, %119 : vector<16x32xf32>
    %121 = arith.addf %3, %120 : vector<16x32xf32>
    %c0_42 = arith.constant 0 : index
    %c0_43 = arith.constant 0 : index
    %c0_44 = arith.constant 0 : index
    %122 = vector.load %arg9[%c0_42, %c0_43, %c0_44] : memref<1x1x32xf32, #tpu.memory_space<vmem>>, vector<1x1x32xf32>
    %123 = vector.shape_cast %122 : vector<1x1x32xf32> to vector<1x32xf32>
    %c0_45 = arith.constant 0 : index
    %c0_46 = arith.constant 0 : index
    %c0_47 = arith.constant 0 : index
    %124 = vector.load %arg10[%c0_45, %c0_46, %c0_47] : memref<1x1x32xf32, #tpu.memory_space<vmem>>, vector<1x1x32xf32>
    %125 = vector.shape_cast %124 : vector<1x1x32xf32> to vector<1x32xf32>
    %cst_48 = arith.constant dense<0.000000e+00> : vector<16xf32>
    %126 = vector.multi_reduction <add>, %121, %cst_48 [1] : vector<16x32xf32> to vector<16xf32>
    %127 = vector.shape_cast %126 : vector<16xf32> to vector<16x1xf32>
    %cst_49 = arith.constant 3.200000e+01 : f32
    %128 = vector.broadcast %cst_49 : f32 to vector<16x1xf32>
    %129 = arith.divf %127, %128 : vector<16x1xf32>
    %130 = vector.broadcast %129 : vector<16x1xf32> to vector<16x32xf32>
    %131 = arith.subf %121, %130 : vector<16x32xf32>
    %132 = arith.mulf %131, %131 : vector<16x32xf32>
    %cst_50 = arith.constant dense<0.000000e+00> : vector<16xf32>
    %133 = vector.multi_reduction <add>, %132, %cst_50 [1] : vector<16x32xf32> to vector<16xf32>
    %134 = vector.shape_cast %133 : vector<16xf32> to vector<16x1xf32>
    %cst_51 = arith.constant 3.200000e+01 : f32
    %135 = vector.broadcast %cst_51 : f32 to vector<16x1xf32>
    %136 = arith.divf %134, %135 : vector<16x1xf32>
    %137 = vector.broadcast %129 : vector<16x1xf32> to vector<16x32xf32>
    %138 = arith.subf %121, %137 : vector<16x32xf32>
    %cst_52 = arith.constant 9.99999974E-6 : f32
    %139 = vector.broadcast %cst_52 : f32 to vector<16x1xf32>
    %140 = arith.addf %136, %139 : vector<16x1xf32>
    %141 = math.rsqrt %140 : vector<16x1xf32>
    %142 = vector.broadcast %141 : vector<16x1xf32> to vector<16x32xf32>
    %143 = arith.mulf %138, %142 : vector<16x32xf32>
    %144 = vector.broadcast %123 : vector<1x32xf32> to vector<16x32xf32>
    %145 = arith.mulf %143, %144 : vector<16x32xf32>
    %146 = vector.broadcast %125 : vector<1x32xf32> to vector<16x32xf32>
    %147 = arith.addf %145, %146 : vector<16x32xf32>
    %c0_53 = arith.constant 0 : index
    %c0_54 = arith.constant 0 : index
    %c0_55 = arith.constant 0 : index
    %148 = vector.load %arg11[%c0_53, %c0_54, %c0_55] : memref<1x32x64xf32, #tpu.memory_space<vmem>>, vector<1x32x64xf32>
    %149 = vector.shape_cast %148 : vector<1x32x64xf32> to vector<32x64xf32>
    %cst_56 = arith.constant dense<0.000000e+00> : vector<16x64xf32>
    %150 = tpu.matmul %147, %149, %cst_56 {dimension_numbers = #tpu.dot_dimension_numbers<[1], [0], [0], [1], [0, 0, 1, 1], [], []>} : vector<16x32xf32>, vector<32x64xf32>, vector<16x64xf32> -> vector<16x64xf32>
    %c0_57 = arith.constant 0 : index
    %c0_58 = arith.constant 0 : index
    %c0_59 = arith.constant 0 : index
    %151 = vector.load %arg12[%c0_57, %c0_58, %c0_59] : memref<1x1x64xf32, #tpu.memory_space<vmem>>, vector<1x1x64xf32>
    %152 = vector.shape_cast %151 : vector<1x1x64xf32> to vector<1x64xf32>
    %153 = vector.broadcast %152 : vector<1x64xf32> to vector<16x64xf32>
    %154 = arith.addf %150, %153 : vector<16x64xf32>
    %cst_60 = arith.constant 5.000000e-01 : f32
    %155 = vector.broadcast %cst_60 : f32 to vector<16x64xf32>
    %156 = arith.mulf %155, %154 : vector<16x64xf32>
    %cst_61 = arith.constant 2.000000e+00 : f32
    %157 = math.sqrt %cst_61 : f32
    %cst_62 = arith.constant 1.000000e+00 : f32
    %158 = arith.divf %cst_62, %157 : f32
    %159 = vector.broadcast %158 : f32 to vector<16x64xf32>
    %160 = arith.mulf %154, %159 : vector<16x64xf32>
    %161 = math.erf %160 : vector<16x64xf32>
    %cst_63 = arith.constant 1.000000e+00 : f32
    %162 = vector.broadcast %cst_63 : f32 to vector<16x64xf32>
    %163 = arith.addf %162, %161 : vector<16x64xf32>
    %164 = arith.mulf %156, %163 : vector<16x64xf32>
    %c0_64 = arith.constant 0 : index
    %c0_65 = arith.constant 0 : index
    %c0_66 = arith.constant 0 : index
    %165 = vector.load %arg13[%c0_64, %c0_65, %c0_66] : memref<1x64x32xf32, #tpu.memory_space<vmem>>, vector<1x64x32xf32>
    %166 = vector.shape_cast %165 : vector<1x64x32xf32> to vector<64x32xf32>
    %cst_67 = arith.constant dense<0.000000e+00> : vector<16x32xf32>
    %167 = tpu.matmul %164, %166, %cst_67 {dimension_numbers = #tpu.dot_dimension_numbers<[1], [0], [0], [1], [0, 0, 1, 1], [], []>} : vector<16x64xf32>, vector<64x32xf32>, vector<16x32xf32> -> vector<16x32xf32>
    %c0_68 = arith.constant 0 : index
    %c0_69 = arith.constant 0 : index
    %c0_70 = arith.constant 0 : index
    %168 = vector.load %arg14[%c0_68, %c0_69, %c0_70] : memref<1x1x32xf32, #tpu.memory_space<vmem>>, vector<1x1x32xf32>
    %169 = vector.shape_cast %168 : vector<1x1x32xf32> to vector<1x32xf32>
    %170 = vector.broadcast %169 : vector<1x32xf32> to vector<16x32xf32>
    %171 = arith.addf %167, %170 : vector<16x32xf32>
    %172 = arith.addf %121, %171 : vector<16x32xf32>
    %c0_71 = arith.constant 0 : index
    %c0_72 = arith.constant 0 : index
    %173 = vector.load %arg16[%c0_71, %c0_72] : memref<16x32xf32, #tpu.memory_space<vmem>>, vector<16x32xf32>
    tpu.vector_store %arg16[%c0_71, %c0_72], %172 {strides = array<i32>} : memref<16x32xf32, #tpu.memory_space<vmem>>, vector<16x32xf32>,
    %c1_i32 = arith.constant 1 : i32
    %174 = arith.cmpi eq, %arg1, %c1_i32 : i32
    %175 = arith.extui %174 : i1 to i32
    %c0_i32_73 = arith.constant 0 : i32
    %176 = arith.cmpi ne, %175, %c0_i32_73 : i32
    scf.if %176 {
      %c0_74 = arith.constant 0 : index
      %c0_75 = arith.constant 0 : index
      %177 = vector.load %arg15[%c0_74, %c0_75] : memref<16x32xf32, #tpu.memory_space<vmem>>, vector<16x32xf32>
      tpu.vector_store %arg15[%c0_74, %c0_75], %172 {strides = array<i32>} : memref<16x32xf32, #tpu.memory_space<vmem>>, vector<16x32xf32>,
    } else {
    }
    return
  }
  func.func @transform_0(%arg0: i32, %arg1: i32) -> (i32, i32) {
    %c0_i32 = arith.constant 0 : i32
    %c0_i32_0 = arith.constant 0 : i32
    return %arg0, %c0_i32 : i32, i32
  }
  func.func @transform_1(%arg0: i32, %arg1: i32) -> (i32, i32, i32) {
    %c0_i32 = arith.constant 0 : i32
    %c0_i32_0 = arith.constant 0 : i32
    %c0_i32_1 = arith.constant 0 : i32
    return %arg1, %c0_i32, %c0_i32_0 : i32, i32, i32
  }
  func.func @transform_2(%arg0: i32, %arg1: i32) -> (i32, i32, i32) {
    %c0_i32 = arith.constant 0 : i32
    %c0_i32_0 = arith.constant 0 : i32
    %c0_i32_1 = arith.constant 0 : i32
    return %arg1, %c0_i32, %c0_i32_0 : i32, i32, i32
  }
  func.func @transform_3(%arg0: i32, %arg1: i32) -> (i32, i32, i32) {
    %c0_i32 = arith.constant 0 : i32
    %c0_i32_0 = arith.constant 0 : i32
    %c0_i32_1 = arith.constant 0 : i32
    return %arg1, %c0_i32, %c0_i32_0 : i32, i32, i32
  }
  func.func @transform_4(%arg0: i32, %arg1: i32) -> (i32, i32, i32) {
    %c0_i32 = arith.constant 0 : i32
    %c0_i32_0 = arith.constant 0 : i32
    %c0_i32_1 = arith.constant 0 : i32
    return %arg1, %c0_i32, %c0_i32_0 : i32, i32, i32
  }
  func.func @transform_5(%arg0: i32, %arg1: i32) -> (i32, i32, i32) {
    %c0_i32 = arith.constant 0 : i32
    %c0_i32_0 = arith.constant 0 : i32
    %c0_i32_1 = arith.constant 0 : i32
    return %arg1, %c0_i32, %c0_i32_0 : i32, i32, i32
  }
  func.func @transform_6(%arg0: i32, %arg1: i32) -> (i32, i32, i32) {
    %c0_i32 = arith.constant 0 : i32
    %c0_i32_0 = arith.constant 0 : i32
    %c0_i32_1 = arith.constant 0 : i32
    return %arg1, %c0_i32, %c0_i32_0 : i32, i32, i32
  }
  func.func @transform_7(%arg0: i32, %arg1: i32) -> (i32, i32, i32) {
    %c0_i32 = arith.constant 0 : i32
    %c0_i32_0 = arith.constant 0 : i32
    %c0_i32_1 = arith.constant 0 : i32
    return %arg1, %c0_i32, %c0_i32_0 : i32, i32, i32
  }
  func.func @transform_8(%arg0: i32, %arg1: i32) -> (i32, i32, i32) {
    %c0_i32 = arith.constant 0 : i32
    %c0_i32_0 = arith.constant 0 : i32
    %c0_i32_1 = arith.constant 0 : i32
    return %arg1, %c0_i32, %c0_i32_0 : i32, i32, i32
  }
  func.func @transform_9(%arg0: i32, %arg1: i32) -> (i32, i32, i32) {
    %c0_i32 = arith.constant 0 : i32
    %c0_i32_0 = arith.constant 0 : i32
    %c0_i32_1 = arith.constant 0 : i32
    return %arg1, %c0_i32, %c0_i32_0 : i32, i32, i32
  }
  func.func @transform_10(%arg0: i32, %arg1: i32) -> (i32, i32, i32) {
    %c0_i32 = arith.constant 0 : i32
    %c0_i32_0 = arith.constant 0 : i32
    %c0_i32_1 = arith.constant 0 : i32
    return %arg1, %c0_i32, %c0_i32_0 : i32, i32, i32
  }
  func.func @transform_11(%arg0: i32, %arg1: i32) -> (i32, i32, i32) {
    %c0_i32 = arith.constant 0 : i32
    %c0_i32_0 = arith.constant 0 : i32
    %c0_i32_1 = arith.constant 0 : i32
    return %arg1, %c0_i32, %c0_i32_0 : i32, i32, i32
  }
  func.func @transform_12(%arg0: i32, %arg1: i32) -> (i32, i32, i32) {
    %c0_i32 = arith.constant 0 : i32
    %c0_i32_0 = arith.constant 0 : i32
    %c0_i32_1 = arith.constant 0 : i32
    return %arg1, %c0_i32, %c0_i32_0 : i32, i32, i32
  }
  func.func @transform_13(%arg0: i32, %arg1: i32) -> (i32, i32) {
    %c0_i32 = arith.constant 0 : i32
    %c0_i32_0 = arith.constant 0 : i32
    return %arg0, %c0_i32 : i32, i32
  }
}

</mosaic_0001>

<bundles_post_ra>
// kernel: tpu_custom_call.1
= control target key start
LH: loop header
LB: loop body
LE: loop exit
PB: predicated region body
PF: predicated region fallthrough
CT: control target
= control target key end

     0   :  { %s3746_s0 = inlined_call_operand.hbm [shape: f32[16,32], index: 0, kind: input, shape index: {}]   ;;  %s3747_s1 = inlined_call_operand.hbm [shape: f32[2,1,32], index: 1, kind: input, shape index: {}]   ;;  %s3748_s2 = inlined_call_operand.vmem [shape: f32[2,1,32], index: 2, kind: input, shape index: {}]   ;;  %s3749_s3 = inlined_call_operand.vmem [shape: f32[2,32,96], index: 3, kind: input, shape index: {}]   ;;  %s3750_s4 = inlined_call_operand.vmem [shape: f32[2,1,96], index: 4, kind: input, shape index: {}]   ;;  %s3751_s5 = inlined_call_operand.vmem [shape: f32[2,32,32], index: 5, kind: input, shape index: {}]   ;;  %s3752_s6 = inlined_call_operand.vmem [shape: f32[2,1,32], index: 6, kind: input, shape index: {}]   ;;  %s3753_s7 = inlined_call_operand.vmem [shape: f32[2,1,32], index: 7, kind: input, shape index: {}]   ;;  %s3754_s8 = inlined_call_operand.vmem [shape: f32[2,1,32], index: 8, kind: input, shape index: {}]   ;;  %s3755_s9 = inlined_call_operand.vmem [shape: f32[2,32,64], index: 9, kind: input, shape index: {}]   ;;  %s3756_s10 = inlined_call_operand.vmem [shape: f32[2,1,64], index: 10, kind: input, shape index: {}]   ;;  %s3757_s11 = inlined_call_operand.vmem [shape: f32[2,64,32], index: 11, kind: input, shape index: {}]   ;;  %s3758_s12 = inlined_call_operand.vmem [shape: f32[2,1,32], index: 12, kind: input, shape index: {}]   ;;  %s3759_s13 = inlined_call_operand.hbm [shape: f32[16,32], index: 13, kind: output, shape index: {}]  }
   0x1   :  { %3766 = sst [smem:[#allocation18_spill]] %s3746_s0 }
   0x2   :  { %3767 = sst [smem:[#allocation19_spill]] %s3747_s1 }
   0x3   :  { %3768 = sst [smem:[#allocation20_spill]] %s3749_s3 }
   0x4   :  { %3769 = sst [smem:[#allocation21_spill]] %s3751_s5 }
   0x5   :  { %3770 = sst [smem:[#allocation22_spill]] %s3756_s10 }
   0x6   :  { %3771 = sst [smem:[#allocation23_spill]] %s3757_s11 }
   0x7   :  { %3772 = sst [smem:[#allocation24_spill]] %s3758_s12 }
   0x8   :  { %3773 = sst [smem:[#allocation25_spill]] %s3759_s13 }
   0x9   :  { %18 = vsyncpa [#allocation4], 0 }
   0xa   :  { %19 = vsyncpa [#allocation7], 0 }
   0xb   :  { %21 = vsyncpa [#allocation7 + $0x1], 0 }
   0xc   :  { %22 = vsyncpa [#allocation5], 0  ;;  %s3326_s25 = smov 0   ;;  %s3328_s26 = smov 0  }
   0xd   :  { %s3330_s27 = smov 0   ;;  %s3332_s28 = smov 0  }
   0xe   :  { %s3334_s29 = smov 0   ;;  %s3336_s30 = smov 0  }
   0xf LB: > { %3774 = sst [smem:[#allocation12_spill]] %s3216_s26  ;;  %s3760_s14 = sadd.s32 4294967295, %s3232_s30   ;;  %s3232_s30 = sphi %s3336_s30, %s28_s30   ;;  %s3228_s29 = sphi %s3334_s29, %s3807_s29   ;;  %s3224_s28 = sphi %s3332_s28, %s3806_s28   ;;  %s3220_s27 = sphi %s3330_s27, %s3805_s27   ;;  %s3216_s26 = sphi %s3328_s26, %s3804_s26   ;;  %s3212_s25 = sphi %s3326_s25, %s3803_s25  }
  0x10   : > { %3775 = sst [smem:[#allocation13_spill]] %s3220_s27  ;;  %p86_p0 = scmp.ne.s32.totalorder %s3216_s26, %s3212_s25 }
  0x11   : > { %3776 = sst [smem:[#allocation14_spill]] %s3228_s29  ;;  %p3358_p1 = scmp.eq.s32.totalorder %s3760_s14, 0 }
  0x12   : > { %3777 = sst [smem:[#allocation15_spill]] %s3232_s30  ;;  %p2704_p2 = scmp.ge.s32.totalorder %s3232_s30, 1 }
  0x13   : > { %p409_p3 = scmp.lt.s32.totalorder %s3232_s30, 3  ;;  %p3366_p4 = por %p3358_p1, %p86_p0 }
  0x14   : > { %s3234_s18 = smov [#allocation3]   ;;  %s37_s21 = sadd.s32 1, %s3228_s29 }
  0x15   : > { %p3370_p5 = pnand %p2704_p2, %p409_p3  ;;  %s424_s19 = sshll.u32 %s3234_s18, 4  ;;  %s425_s19 = int_to_ptr.vmem [resolvable:$true] %s424_s19 }
  0x16   : > { %s3107_s22 = scalar_lea.vmem %s425_s19, 256  ;;  %p3115_p12 = scmp.lt.s32.totalorder %s425_s19, %s425_s19 }
  0x17   : > { %p2970_p6 = pneg %p3370_p5  ;;  %p3108_p9 = scmp.ne.s32.totalorder %s425_s19, %s3107_s22 }
  0x18   : > { %p3116_p13 = scmp.lt.s32.totalorder %s3107_s22, %s3107_s22 }
  0x19   : > { %p3378_p7 = pnand %p2970_p6, %p3358_p1 }
  0x1a   : > { %p3117_p0 = por %p3116_p13, %p3115_p12 }
  0x1b   : > { %p3098_p8 = pneg %p3378_p7 }
  0x1d   : > { %p3110_p10 = pnand %p3108_p9, %p3098_p8 }
  0x1f   : > { %p3111_p11 = pneg %p3110_p10 }
  0x21   : > { %p3118_p2 = pnand %p3117_p0, %p3111_p11 }
  0x23   : > { %3121 = shalt.err (!%p3118_p2)
}
  0x24   : > { %s3235_s23 = smov 128   ;;  %s3236_s24 = smov 8  }
  0x25   : > { %s3782_s0 = sld [smem:[#allocation18_spill]]  ;;  %p38_p3 = scmp.ge.s32.totalorder %s37_s21, 2 }
  0x26   : > { %s73_s22 = sadd.s32 1, %s3220_s27  ;;  %p80_p6 = scmp.ne.s32.totalorder %s3220_s27, %s3216_s26 }
  0x27   : > { %p81_p8 = scmp.eq.s32.totalorder %s3232_s30, 0  ;;  %s3809_s21 = smov (%p38_p3, %s37_s21), 0 }
  0x28   : > { %3783 = sst [smem:[#allocation16_spill]] %s3809_s21  ;;  %p2979_p10 = scmp.lt.s32.totalorder %s3232_s30, 2 }
  0x29   : > { %p82_p9 = por %p81_p8, %p80_p6  ;;  %s70_s14 = ssub.s32 %s3228_s29, %s3809_s21 }
  0x2a   : > { %s438_s13 = sand.u32 1, %s3220_s27   ;;  %p71_p11 = scmp.eq.s32.totalorder %s70_s14, 0 }
  0x2b   : > { %2973 = dma.hbm_to_vmem [thread:$0]  (!%p3378_p7), %s3782_s0, 256, %s425_s19, [#allocation4], %s3235_s23, %s3235_s23, %s3236_s24  }
  0x2c   : > { %s2707_s11 = sshll.u32 %s3228_s29, 4  ;;  %s3785_s1 = sld [smem:[#allocation19_spill]] }
  0x2d   : > { %s3402_s12 = scalar_select %p71_p11, %s3220_s27, %s73_s22  }
  0x2e   : > { %s441_s19 = scalar_lea.vmem [#allocation6], %s438_s13  ;;  %p3407_p7 = pnand %p2979_p10, %p82_p9 }
  0x2f   : > { %3784 = sst [smem:[#allocation17_spill]] %s3402_s12  ;;  %s448_s23 = sshll.u32 %s441_s19, 4  ;;  %s449_s23 = int_to_ptr.vmem [resolvable:$true] %s448_s23 }
  0x30   : > { %s439_s18 = scalar_lea.sflag [#allocation7], %s438_s13  ;;  %p3124_p12 = pneg %p3407_p7 }
  0x31   : > { %s3135_s0 = scalar_lea.vmem %s449_s23, 16  ;;  %s3237_s14 = smov [#allocation6]  }
  0x32   : > { %s446_s25 = scalar_lea.hbm %s3785_s1, %s2707_s11  ;;  %p3136_p13 = scmp.ne.s32.totalorder %s449_s23, %s3135_s0 }
  0x33   : > { %s3140_s22 = sshll.u32 %s3237_s14, 4  ;;  %s3141_s22 = int_to_ptr.vmem [resolvable:$false] %s3140_s22 }
  0x34   : > { %p3138_p0 = pnand %p3136_p13, %p3124_p12  ;;  %s3142_s10 = scalar_lea.vmem %s3141_s22, 32 }
  0x35   : > { %p3143_p3 = scmp.lt.s32.totalorder %s449_s23, %s3141_s22  ;;  %p3144_p6 = scmp.lt.s32.totalorder %s3142_s10, %s3135_s0 }
  0x36   : > { %p3139_p2 = pneg %p3138_p0 }
  0x37   : > { %p3145_p8 = por %p3144_p6, %p3143_p3 }
  0x39   : > { %p3146_p11 = pnand %p3145_p8, %p3139_p2 }
  0x3b   : > { %3149 = shalt.err (!%p3146_p11)
}
  0x3c   : > { %2977 = dma.hbm_to_vmem [thread:$0]  (!%p3407_p7), %s446_s25, 16, %s449_s23, %s439_s18  }
  0x3d   : > { %531 = sbr.rel (%p3370_p5) target bundleno = 4020 (0xfb4), region = 72 }
  0x42   : > { %3199 = dma.done.wait (%p3358_p1), [#allocation4], 256  }
  0x43   : > { %3201 = vsyncadd (%p3358_p1), [#allocation4], 4294967040  ;;  %s537_s11 = sand.u32 1, %s3216_s26  }
  0x44   : > { %s538_s13 = scalar_lea.sflag [#allocation7], %s537_s11  ;;  %s3422_s0 = scalar_lea.vmem [#allocation6], %s537_s11 }
  0x45   : > { %3203 = dma.done.wait (%p3366_p4), %s538_s13, 16  }
  0x46   : > { %3205 = vsyncadd (%p3366_p4), %s538_s13, 4294967280  ;;  %p619_p5 = scmp.lt.s32.totalorder %s3224_s28, 1  ;;  %s3787_s3 = sld [smem:[#allocation20_spill]] }
  0x47   : > { %s3788_s5 = sld [smem:[#allocation21_spill]]  ;;  %p2718_p1 = scmp.ne.s32.totalorder %s3224_s28, 0 }
  0x48   : > { %s3430_s17 = scalar_select %p619_p5, %s3224_s28, 1 }
  0x49   : > { %s3789_s22 = sld [smem:[#allocation22_spill]] }
  0x4a   : > { %s2764_s16 = sshll.u32 %s3430_s17, 5  ;;  %s2767_s27 = sshll.u32 %s3430_s17, 6 }
  0x4b   : > { %s3466_s14 = scalar_lea.vmem %s3755_s9, %s2764_s16  ;;  %s3790_s1 = sld [smem:[#allocation24_spill]] }
  0x4c   : > { %s3440_s24 = scalar_lea.vmem %s3787_s3, %s2764_s16  ;;  %s643_s3 = scalar_lea.vmem %s3754_s8, %s3430_s17 }
  0x4d   : > { %s3449_s13 = scalar_lea.vmem %s3788_s5, %s2764_s16  ;;  %s3791_s29 = sld [smem:[#allocation23_spill]] }
  0x4f   : > { %s651_s5 = scalar_lea.vmem %s3789_s22, %s3430_s17  ;;  %664 = sbr.rel (%p2718_p1) target bundleno = 86 (0x56), region = 84 }
  0x51   : > { %s659_s26 = scalar_lea.vmem %s3790_s1, %s3430_s17 }
  0x53   : > { %s3480_s30 = scalar_lea.vmem %s3791_s29, %s2767_s27 }
  0x54   : > { %v665_v0 = vld [vmem:[#allocation3] sm:$0xff]  ;;  %vm667_vm0 = vcmask 261120   ;;  %v666_v1 = vld [vmem:[#allocation3 + $0x8] sm:$0xff] }
  0x55   : > { %668 = vst.msk [vmem:[#allocation2] sm:$0xff] %vm667_vm0, %v665_v0  ;;  %669 = vst.msk [vmem:[#allocation2 + $0x8] sm:$0xff] %vm667_vm0, %v666_v1 }
  0x56 PF: > { %vm674_vm1 = vcmask 261120   ;;  %v721_v16 = vld [vmem:[%s3440_s24 + $0x18] sm:$0xff]  ;;  %v720_v17 = vld [vmem:[%s3440_s24 + $0x10] sm:$0xff]  ;;  %v719_v18 = vld [vmem:[%s3440_s24 + $0x8] sm:$0xff]  ;;  %s3792_s27 = scalar_lea.vmem %s3748_s2, %s3430_s17  ;;  %v3238_v36 = vmov 0.0   ;;  %vm3239_vm2 = vmmov 0   ;;  %s3793_s16 = scalar_lea.vmem %s3750_s4, %s3430_s17 }
  0x57   : > { %2828 = vmatprep.subr.mxu1 %v721_v16  ;;  %v718_v19 = vld [vmem:[%s3440_s24] sm:$0xff]  ;;  %2849 = vmatprep.subr.mxu0 %v3238_v36  ;;  %s3240_s24 = smov 96   ;;  %vm813_vm3 = vcmask 64512   ;;  %s3241_s22 = smov 64   ;;  %vm2158_vm4 = vcmask 195584   ;;  %vm2155_vm5 = vcmask 130048  }
  0x58   : > { %2829 = vmatpush3.msra.mxu1 %v721_v16  ;;  %v2719_v27 = vld [vmem:[%s3422_s0] ss:$0 sm:$0xff]  ;;  %2851 = vmatprep.mubr.msk.f32.mxu0 %vm3239_vm2, %v3238_v36  ;;  %s3242_s19 = smov 88   ;;  %s3243_s23 = smov 120   ;;  %vm2416_vm6 = vcmask 523264  }
  0x59   : > { %2830 = vmatprep.subr.mxu1 %v720_v17  ;;  %v2720_v29 = vld [vmem:[%s3792_s27] ss:$0 sm:$0xff]  ;;  %s3244_s18 = smov 56   ;;  %s3245_s10 = smov 80  }
  0x5a   : > { %2831 = vmatpush3.msra.mxu1 %v720_v17  ;;  %v2721_v37 = vld [vmem:[%s3793_s16] ss:$0 sm:$0xff]  ;;  %s3246_s11 = smov 112   ;;  %s3247_s20 = smov 48  }
  0x5b   : > { %2832 = vmatprep.subr.mxu1 %v719_v18  ;;  %s3248_s15 = smov 72   ;;  %s3249_s21 = smov 104  }
  0x5c   : > { %v3483_v2 = vld [vmem:[#allocation2] sm:$0xff]  ;;  %v3485_v3 = vld [vmem:[#allocation2 + $0x8] sm:$0xff]  ;;  %2833 = vmatpush3.msra.mxu1 %v719_v18  ;;  %s3250_s25 = smov 40   ;;  %s3251_s1 = smov 8  }
  0x5d   : > { %v675_v4 = vsel %vm674_vm1, %v3483_v2, 0.0  ;;  %v678_v5 = vsel %vm674_vm1, %v3485_v3, 0.0  ;;  %2834 = vmatprep.subr.mxu1 %v718_v19  ;;  %s3252_s12 = smov 16   ;;  %s3253_s27 = smov 24  }
  0x5e   : > { %676 = vadd.xlane.f32.xlu0 %v675_v4  ;;  %2835 = vmatpush3.msra.mxu1 %v718_v19  ;;  %s3794_s0 = scalar_lea.vmem %s3752_s6, %s3430_s17  ;;  %p2759_p4 = scmp.ne.s32.totalorder %s3224_s28, 1 }
  0x5f   : > { %2839 = vmatprep.subr.mxu1 %v3238_v36 }
  0x62   : > { %679 = vadd.xlane.f32.xlu0 %v678_v5 }
  0xe7   : > { %v677_v6 = vpop.xlane.xlu0 %676 }
  0xe8   : > { %v682_v7 = vmul.f32 0.03125, %v677_v6 }
  0xea   : > { %v684_v8 = vsub.f32 %v3483_v2, %v682_v7 }
  0xeb   : > { %v680_v9 = vpop.xlane.xlu0 %679 }
  0xec   : > { %v683_v10 = vmul.f32 0.03125, %v680_v9  ;;  %v686_v11 = vmul.f32 %v684_v8, %v684_v8 }
  0xee   : > { %v685_v12 = vsub.f32 %v3485_v3, %v683_v10  ;;  %v688_v13 = vsel %vm674_vm1, %v686_v11, 0.0 }
  0xef   : > { %689 = vadd.xlane.f32.xlu1 %v688_v13 }
  0xf0   : > { %v687_v14 = vmul.f32 %v685_v12, %v685_v12 }
  0xf2   : > { %v691_v15 = vsel %vm674_vm1, %v687_v14, 0.0 }
  0xf3   : > { %692 = vadd.xlane.f32.xlu1 %v691_v15 }
 0x178   : > { %v690_v20 = vpop.xlane.xlu1 %689 }
 0x179   : > { %v694_v21 = vmul.f32 0.03125, %v690_v20 }
 0x17b   : > { %v696_v22 = vadd.f32 1e-05, %v694_v21 }
 0x17c   : > { %v693_v23 = vpop.xlane.xlu1 %692 }
 0x17d   : > { %3052 = vrsqrt.f32 %v696_v22  ;;  %v695_v24 = vmul.f32 0.03125, %v693_v23 }
 0x17f   : > { %v697_v25 = vadd.f32 1e-05, %v695_v24 }
 0x181   : > { %3054 = vrsqrt.f32 %v697_v25 }
 0x18a   : > { %v3053_v26 = vpop.eup %3052 }
 0x18b   : > { %v700_v28 = vmul.f32 %v3053_v26, %v684_v8 }
 0x18d   : > { %v708_v30 = vmul.f32 %v2719_v27, %v700_v28 }
 0x18e   : > { %v3055_v31 = vpop.eup %3054 }
 0x18f   : > { %v701_v32 = vmul.f32 %v3055_v31, %v685_v12  ;;  %v716_v33 = vadd.f32 %v2720_v29, %v708_v30 }
 0x191   : > { %v709_v34 = vmul.f32 %v2719_v27, %v701_v32  ;;  %2836 = vmatprep.mubr.msk.f32.mxu1 %vm674_vm1, %v716_v33 }
 0x193   : > { %v717_v35 = vadd.f32 %v2720_v29, %v709_v34 }
 0x195   : > { %2837 = vmatmul.mubr.msk.f32.vlgmr.msra.gmra.mxu1 %vm674_vm1, %v717_v35 }
 0x196   : > { %2841 = vmatprep.mubr.msk.f32.mxu1 %vm3239_vm2, %v3238_v36 }
 0x255   : > { %v2838_v38 = vpop.f32.mrf.mxu1 }
 0x256   : > { %v3518_v39 = vadd.f32 %v2838_v38, %v2721_v37 }
 0x257   : > { %v801_v40 = vpop.f32.mrf.mxu1 }
 0x258   : > { %v3520_v41 = vadd.f32 %v2721_v37, %v801_v40  ;;  %889 = vrot.lane.b32.xlu1 %v3518_v39, %s3240_s24 }
 0x25a   : > { %811 = vrot.lane.b32.xlu0 %v3520_v41, %s3240_s24 }
 0x2ca   : > { %v890_v43 = vpop.permute.xlu1 %889 }
 0x2cc   : > { %v812_v42 = vpop.permute.xlu0 %811 }
 0x2cd   : > { %2840 = vmatpush3.xpose.msk.msra.mxu1 %vm813_vm3, %v812_v42 }
 0x2ce   : > { %2844 = vmatprep.subr.mxu1 %v3238_v36 }
 0x2d0   : > { %2842 = vmatmul.mubr.msk.f32.vlgmr.msra.gmra.mxu1 %vm813_vm3, %v3520_v41 }
 0x2d1   : > { %2845 = vmatpush3.xpose.msk.msra.mxu1 %vm813_vm3, %v890_v43  ;;  %2846 = vmatprep.mubr.msk.f32.mxu1 %vm3239_vm2, %v3238_v36 }
 0x2d2   : > { %2854 = vmatprep.subr.mxu1 %v3238_v36 }
 0x2d4   : > { %2847 = vmatmul.mubr.msk.f32.vlgmr.msra.gmra.mxu1 %vm813_vm3, %v3518_v39 }
 0x2d5   : > { %2856 = vmatprep.mubr.msk.f32.mxu1 %vm3239_vm2, %v3238_v36 }
 0x390   : > { %v884_v44 = vpop.f32.mrf.mxu1 }
 0x391   : > { %v965_v45 = vsel %vm813_vm3, %v884_v44, -inf }
 0x392   : > { %966 = vmax.xlane.f32.xlu1 %v965_v45  ;;  %v2843_v46 = vpop.f32.mrf.mxu1 }
 0x394   : > { %v961_v47 = vpop.f32.mrf.mxu1 }
 0x395   : > { %v968_v48 = vsel %vm813_vm3, %v961_v47, -inf }
 0x396   : > { %969 = vmax.xlane.f32.xlu0 %v968_v48  ;;  %v2848_v49 = vpop.f32.mrf.mxu1 }
 0x3a3   : > { %1063 = vrot.lane.b32.xlu1 %v3518_v39, %s3241_s22 }
 0x3a7   : > { %1141 = vrot.lane.b32.xlu1 %v3520_v41, %s3242_s19 }
 0x3ab   : > { %1219 = vrot.lane.b32.xlu1 %v3518_v39, %s3242_s19 }
 0x41b   : > { %v967_v50 = vpop.xlane.xlu1 %966 }
 0x41c   : > { %v971_v51 = vsub.f32 %v884_v44, %v967_v50 }
 0x41e   : > { %v973_v52 = vmul.f32 1.442695, %v971_v51 }
 0x41f   : > { %v1064_v53 = vpop.permute.xlu1 %1063  ;;  %v970_v54 = vpop.xlane.xlu0 %969 }
 0x420   : > { %3056 = vpow2.f32 %v973_v52  ;;  %v972_v55 = vsub.f32 %v961_v47, %v970_v54  ;;  %2855 = vmatpush3.msra.mxu1 %v1064_v53 }
 0x421   : > { %2864 = vmatprep.subr.mxu1 %v3238_v36 }
 0x422   : > { %v975_v56 = vmul.f32 1.442695, %v972_v55 }
 0x423   : > { %v1142_v61 = vpop.permute.xlu1 %1141 }
 0x424   : > { %3058 = vpow2.f32 %v975_v56 }
 0x427   : > { %v1220_v62 = vpop.permute.xlu1 %1219 }
 0x42d   : > { %v3057_v57 = vpop.eup %3056 }
 0x42e   : > { %v977_v58 = vsel %vm813_vm3, %v3057_v57, 0.0 }
 0x42f   : > { %978 = vadd.xlane.f32.xlu0 %v977_v58 }
 0x431   : > { %v3059_v59 = vpop.eup %3058 }
 0x432   : > { %v980_v60 = vsel %vm813_vm3, %v3059_v59, 0.0 }
 0x433   : > { %981 = vadd.xlane.f32.xlu1 %v980_v60 }
 0x444   : > { %1217 = vrot.lane.b32.xlu1 %v3518_v39, %s3243_s23 }
 0x445   : > { %987 = vrot.lane.b32.xlu0 %v3520_v41, %s3241_s22  ;;  %s3795_s22 = scalar_lea.vmem %s3753_s7, %s3430_s17 }
 0x449   : > { %1139 = vrot.lane.b32.xlu0 %v3520_v41, %s3243_s23 }
 0x4b8   : > { %v979_v63 = vpop.xlane.xlu0 %978 }
 0x4b9   : > { %3060 = vrcp.f32 %v979_v63 }
 0x4bc   : > { %v982_v0 = vpop.xlane.xlu1 %981  ;;  %v988_v1 = vpop.permute.xlu0 %987 }
 0x4bd   : > { %3062 = vrcp.f32 %v982_v0  ;;  %2850 = vmatpush3.msra.mxu0 %v988_v1 }
 0x4be   : > { %2859 = vmatprep.subr.mxu0 %v3238_v36 }
 0x4c0   : > { %v1140_v8 = vpop.permute.xlu0 %1139  ;;  %v1218_v9 = vpop.permute.xlu1 %1217 }
 0x4c6   : > { %v3061_v4 = vpop.eup %3060 }
 0x4c7   : > { %v985_v5 = vmul.f32 %v3061_v4, %v3057_v57 }
 0x4c9   : > { %2852 = vmatmul.mubr.msk.f32.vlgmr.msra.gmra.mxu0 %vm813_vm3, %v985_v5 }
 0x4ca   : > { %v3063_v6 = vpop.eup %3062  ;;  %2860 = vmatpush3.xpose.msk.msra.mxu0 %vm813_vm3, %v1142_v61  ;;  %2861 = vmatprep.mubr.msk.f32.mxu0 %vm3239_vm2, %v3238_v36 }
 0x4cb   : > { %v986_v7 = vmul.f32 %v3063_v6, %v3059_v59  ;;  %2869 = vmatprep.subr.mxu0 %v3238_v36 }
 0x4cd   : > { %2857 = vmatmul.mubr.msk.f32.vlgmr.msra.gmra.mxu1 %vm813_vm3, %v986_v7  ;;  %2862 = vmatmul.mubr.msk.f32.vlgmr.msra.gmra.mxu0 %vm813_vm3, %v1140_v8 }
 0x4ce   : > { %2865 = vmatpush3.xpose.msk.msra.mxu1 %vm813_vm3, %v1220_v62  ;;  %2866 = vmatprep.mubr.msk.f32.mxu1 %vm3239_vm2, %v3238_v36 }
 0x4cf   : > { %2874 = vmatprep.subr.mxu1 %v3238_v36  ;;  %2871 = vmatprep.mubr.msk.f32.mxu0 %vm3239_vm2, %v3238_v36 }
 0x4d1   : > { %2867 = vmatmul.mubr.msk.f32.vlgmr.msra.gmra.mxu1 %vm813_vm3, %v1218_v9 }
 0x4d2   : > { %2876 = vmatprep.mubr.msk.f32.mxu1 %vm3239_vm2, %v3238_v36 }
 0x589   : > { %v3564_v10 = vpop.f32.mrf.mxu0 }
 0x58b   : > { %v2853_v11 = vpop.f32.mrf.mxu0 }
 0x58d   : > { %v3566_v12 = vpop.f32.mrf.mxu1  ;;  %v1213_v13 = vpop.f32.mrf.mxu0 }
 0x58e   : > { %v1295_v14 = vsel %vm813_vm3, %v1213_v13, -inf }
 0x58f   : > { %1296 = vmax.xlane.f32.xlu0 %v1295_v14  ;;  %v2858_v15 = vpop.f32.mrf.mxu1  ;;  %v2863_v16 = vpop.f32.mrf.mxu0 }
 0x591   : > { %v1291_v17 = vpop.f32.mrf.mxu1 }
 0x592   : > { %v1298_v18 = vsel %vm813_vm3, %v1291_v17, -inf }
 0x593   : > { %1299 = vmax.xlane.f32.xlu1 %v1298_v18  ;;  %v2868_v19 = vpop.f32.mrf.mxu1 }
 0x5a4   : > { %1393 = vrot.lane.b32.xlu1 %v3518_v39, %s3244_s18 }
 0x5a5   : > { %1317 = vrot.lane.b32.xlu0 %v3520_v41, %s3244_s18 }
 0x5a8   : > { %1471 = vrot.lane.b32.xlu1 %v3520_v41, %s3245_s10 }
 0x5ac   : > { %1549 = vrot.lane.b32.xlu1 %v3518_v39, %s3245_s10 }
 0x5b0   : > { %1547 = vrot.lane.b32.xlu1 %v3518_v39, %s3246_s11 }
 0x618   : > { %v1297_v20 = vpop.xlane.xlu0 %1296 }
 0x619   : > { %v1301_v21 = vsub.f32 %v1213_v13, %v1297_v20 }
 0x61b   : > { %v1303_v22 = vmul.f32 1.442695, %v1301_v21 }
 0x61c   : > { %v1318_v23 = vpop.permute.xlu0 %1317  ;;  %v1300_v24 = vpop.xlane.xlu1 %1299 }
 0x61d   : > { %3064 = vpow2.f32 %v1303_v22  ;;  %v1302_v25 = vsub.f32 %v1291_v17, %v1300_v24  ;;  %2870 = vmatpush3.msra.mxu0 %v1318_v23 }
 0x61e   : > { %2879 = vmatprep.subr.mxu0 %v3238_v36 }
 0x61f   : > { %v1305_v26 = vmul.f32 1.442695, %v1302_v25 }
 0x620   : > { %v1394_v27 = vpop.permute.xlu1 %1393 }
 0x621   : > { %3066 = vpow2.f32 %v1305_v26  ;;  %2875 = vmatpush3.msra.mxu1 %v1394_v27 }
 0x622   : > { %2884 = vmatprep.subr.mxu1 %v3238_v36 }
 0x624   : > { %v1472_v34 = vpop.permute.xlu1 %1471 }
 0x628   : > { %v1550_v40 = vpop.permute.xlu1 %1549 }
 0x62a   : > { %v3065_v28 = vpop.eup %3064 }
 0x62b   : > { %v1307_v29 = vsel %vm813_vm3, %v3065_v28, 0.0 }
 0x62c   : > { %1308 = vadd.xlane.f32.xlu0 %v1307_v29  ;;  %v1548_v44 = vpop.permute.xlu1 %1547 }
 0x62e   : > { %v3067_v30 = vpop.eup %3066 }
 0x62f   : > { %v1310_v31 = vsel %vm813_vm3, %v3067_v30, 0.0 }
 0x630   : > { %1311 = vadd.xlane.f32.xlu0 %v1310_v31 }
 0x646   : > { %1469 = vrot.lane.b32.xlu0 %v3520_v41, %s3246_s11 }
 0x6b5   : > { %v1309_v32 = vpop.xlane.xlu0 %1308 }
 0x6b6   : > { %3068 = vrcp.f32 %v1309_v32 }
 0x6b9   : > { %v1312_v33 = vpop.xlane.xlu0 %1311 }
 0x6ba   : > { %3070 = vrcp.f32 %v1312_v33 }
 0x6bd   : > { %v1470_v43 = vpop.permute.xlu0 %1469 }
 0x6c3   : > { %v3069_v35 = vpop.eup %3068 }
 0x6c4   : > { %v1315_v37 = vmul.f32 %v3069_v35, %v3065_v28 }
 0x6c6   : > { %2872 = vmatmul.mubr.msk.f32.vlgmr.msra.gmra.mxu0 %vm813_vm3, %v1315_v37 }
 0x6c7   : > { %v3071_v38 = vpop.eup %3070  ;;  %2880 = vmatpush3.xpose.msk.msra.mxu0 %vm813_vm3, %v1472_v34  ;;  %2881 = vmatprep.mubr.msk.f32.mxu0 %vm3239_vm2, %v3238_v36 }
 0x6c8   : > { %v1316_v42 = vmul.f32 %v3071_v38, %v3067_v30  ;;  %2889 = vmatprep.subr.mxu0 %v3238_v36 }
 0x6ca   : > { %2877 = vmatmul.mubr.msk.f32.vlgmr.msra.gmra.mxu1 %vm813_vm3, %v1316_v42  ;;  %2882 = vmatmul.mubr.msk.f32.vlgmr.msra.gmra.mxu0 %vm813_vm3, %v1470_v43 }
 0x6cb   : > { %2885 = vmatpush3.xpose.msk.msra.mxu1 %vm813_vm3, %v1550_v40  ;;  %2886 = vmatprep.mubr.msk.f32.mxu1 %vm3239_vm2, %v3238_v36 }
 0x6cc   : > { %2894 = vmatprep.subr.mxu1 %v3238_v36  ;;  %2891 = vmatprep.mubr.msk.f32.mxu0 %vm3239_vm2, %v3238_v36 }
 0x6ce   : > { %2887 = vmatmul.mubr.msk.f32.vlgmr.msra.gmra.mxu1 %vm813_vm3, %v1548_v44 }
 0x6cf   : > { %2896 = vmatprep.mubr.msk.f32.mxu1 %vm3239_vm2, %v3238_v36 }
 0x786   : > { %v3596_v45 = vpop.f32.mrf.mxu0 }
 0x788   : > { %v2873_v46 = vpop.f32.mrf.mxu0 }
 0x789   : > { %v2164_v46 = vld [vmem:[%s3449_s13 + $0x18] sm:$0xff] }
 0x78a   : > { %v3598_v47 = vpop.f32.mrf.mxu1  ;;  %v1543_v48 = vpop.f32.mrf.mxu0 }
 0x78b   : > { %v1625_v49 = vsel %vm813_vm3, %v1543_v48, -inf }
 0x78c   : > { %1626 = vmax.xlane.f32.xlu0 %v1625_v49  ;;  %v2878_v50 = vpop.f32.mrf.mxu1  ;;  %v2883_v51 = vpop.f32.mrf.mxu0 }
 0x78e   : > { %v1621_v52 = vpop.f32.mrf.mxu1 }
 0x78f   : > { %v1628_v53 = vsel %vm813_vm3, %v1621_v52, -inf }
 0x790   : > { %1629 = vmax.xlane.f32.xlu1 %v1628_v53  ;;  %v2888_v54 = vpop.f32.mrf.mxu1 }
 0x7a1   : > { %1723 = vrot.lane.b32.xlu1 %v3518_v39, %s3247_s20 }
 0x7a2   : > { %1647 = vrot.lane.b32.xlu0 %v3520_v41, %s3247_s20 }
 0x7a5   : > { %1801 = vrot.lane.b32.xlu1 %v3520_v41, %s3248_s15 }
 0x7a9   : > { %1879 = vrot.lane.b32.xlu1 %v3518_v39, %s3248_s15 }
 0x7ad   : > { %1877 = vrot.lane.b32.xlu1 %v3518_v39, %s3249_s21 }
 0x815   : > { %v1627_v55 = vpop.xlane.xlu0 %1626 }
 0x816   : > { %v1631_v56 = vsub.f32 %v1543_v48, %v1627_v55  ;;  %v2161_v48 = vld [vmem:[%s3449_s13] sm:$0xff] }
 0x818   : > { %v1633_v57 = vmul.f32 1.442695, %v1631_v56 }
 0x819   : > { %v1648_v58 = vpop.permute.xlu0 %1647  ;;  %v1630_v59 = vpop.xlane.xlu1 %1629 }
 0x81a   : > { %3072 = vpow2.f32 %v1633_v57  ;;  %v1632_v60 = vsub.f32 %v1621_v52, %v1630_v59  ;;  %2890 = vmatpush3.msra.mxu0 %v1648_v58 }
 0x81b   : > { %2899 = vmatprep.subr.mxu0 %v3238_v36 }
 0x81c   : > { %v1635_v61 = vmul.f32 1.442695, %v1632_v60 }
 0x81d   : > { %v1724_v62 = vpop.permute.xlu1 %1723 }
 0x81e   : > { %3074 = vpow2.f32 %v1635_v61  ;;  %2895 = vmatpush3.msra.mxu1 %v1724_v62 }
 0x81f   : > { %2904 = vmatprep.subr.mxu1 %v3238_v36 }
 0x821   : > { %v1802_v7 = vpop.permute.xlu1 %1801 }
 0x825   : > { %v1880_v13 = vpop.permute.xlu1 %1879 }
 0x827   : > { %v3073_v63 = vpop.eup %3072 }
 0x828   : > { %v1637_v0 = vsel %vm813_vm3, %v3073_v63, 0.0 }
 0x829   : > { %1638 = vadd.xlane.f32.xlu0 %v1637_v0  ;;  %v1878_v16 = vpop.permute.xlu1 %1877 }
 0x82b   : > { %v3075_v1 = vpop.eup %3074 }
 0x82c   : > { %v1640_v4 = vsel %vm813_vm3, %v3075_v1, 0.0 }
 0x82d   : > { %1641 = vadd.xlane.f32.xlu0 %v1640_v4 }
 0x843   : > { %1799 = vrot.lane.b32.xlu0 %v3520_v41, %s3249_s21 }
 0x8b2   : > { %v1639_v5 = vpop.xlane.xlu0 %1638 }
 0x8b3   : > { %3076 = vrcp.f32 %v1639_v5 }
 0x8b6   : > { %v1642_v6 = vpop.xlane.xlu0 %1641 }
 0x8b7   : > { %3078 = vrcp.f32 %v1642_v6 }
 0x8ba   : > { %v1800_v15 = vpop.permute.xlu0 %1799 }
 0x8c0   : > { %v3077_v8 = vpop.eup %3076 }
 0x8c1   : > { %v1645_v9 = vmul.f32 %v3077_v8, %v3073_v63 }
 0x8c3   : > { %2892 = vmatmul.mubr.msk.f32.vlgmr.msra.gmra.mxu0 %vm813_vm3, %v1645_v9 }
 0x8c4   : > { %v3079_v11 = vpop.eup %3078  ;;  %2900 = vmatpush3.xpose.msk.msra.mxu0 %vm813_vm3, %v1802_v7  ;;  %2901 = vmatprep.mubr.msk.f32.mxu0 %vm3239_vm2, %v3238_v36 }
 0x8c5   : > { %v1646_v14 = vmul.f32 %v3079_v11, %v3075_v1  ;;  %2909 = vmatprep.subr.mxu0 %v3238_v36 }
 0x8c7   : > { %2897 = vmatmul.mubr.msk.f32.vlgmr.msra.gmra.mxu1 %vm813_vm3, %v1646_v14  ;;  %2902 = vmatmul.mubr.msk.f32.vlgmr.msra.gmra.mxu0 %vm813_vm3, %v1800_v15 }
 0x8c8   : > { %2905 = vmatpush3.xpose.msk.msra.mxu1 %vm813_vm3, %v1880_v13  ;;  %2906 = vmatprep.mubr.msk.f32.mxu1 %vm3239_vm2, %v3238_v36 }
 0x8c9   : > { %2914 = vmatprep.subr.mxu1 %v3238_v36  ;;  %2911 = vmatprep.mubr.msk.f32.mxu0 %vm3239_vm2, %v3238_v36 }
 0x8cb   : > { %2907 = vmatmul.mubr.msk.f32.vlgmr.msra.gmra.mxu1 %vm813_vm3, %v1878_v16 }
 0x8cc   : > { %2916 = vmatprep.mubr.msk.f32.mxu1 %vm3239_vm2, %v3238_v36 }
 0x983   : > { %v1719_v17 = vpop.f32.mrf.mxu0 }
 0x985   : > { %v2893_v18 = vpop.f32.mrf.mxu0 }
 0x987   : > { %v1795_v19 = vpop.f32.mrf.mxu1  ;;  %v1873_v20 = vpop.f32.mrf.mxu0 }
 0x988   : > { %v1955_v21 = vsel %vm813_vm3, %v1873_v20, -inf }
 0x989   : > { %1956 = vmax.xlane.f32.xlu0 %v1955_v21  ;;  %v2898_v22 = vpop.f32.mrf.mxu1  ;;  %v2903_v23 = vpop.f32.mrf.mxu0  ;;  %v2301_v21 = vld [vmem:[%s3466_s14 + $0x10] sm:$0xff] }
 0x98a   : > { %v2300_v22 = vld [vmem:[%s3466_s14 + $0x8] sm:$0xff]  ;;  %v2299_v23 = vld [vmem:[%s3466_s14] sm:$0xff] }
 0x98b   : > { %v1951_v24 = vpop.f32.mrf.mxu1 }
 0x98c   : > { %v1958_v25 = vsel %vm813_vm3, %v1951_v24, -inf }
 0x98d   : > { %1959 = vmax.xlane.f32.xlu1 %v1958_v25  ;;  %v2908_v26 = vpop.f32.mrf.mxu1 }
 0x99e   : > { %2053 = vrot.lane.b32.xlu1 %v3518_v39, %s3250_s25 }
 0x9a2   : > { %2131 = vrot.lane.b32.xlu1 %v3596_v45, %s3251_s1 }
 0x9a6   : > { %2133 = vrot.lane.b32.xlu1 %v3598_v47, %s3251_s1  ;;  %v2163_v47 = vld [vmem:[%s3449_s13 + $0x10] sm:$0xff] }
 0x9aa   : > { %2141 = vrot.lane.b32.xlu1 %v1795_v19, %s3252_s12 }
 0xa12   : > { %v1957_v36 = vpop.xlane.xlu0 %1956 }
 0xa13   : > { %v1961_v27 = vsub.f32 %v1873_v20, %v1957_v36  ;;  %v2302_v20 = vld [vmem:[%s3466_s14 + $0x18] sm:$0xff] }
 0xa15   : > { %v1963_v28 = vmul.f32 1.442695, %v1961_v27 }
 0xa16   : > { %v1960_v29 = vpop.xlane.xlu1 %1959 }
 0xa17   : > { %3080 = vpow2.f32 %v1963_v28  ;;  %v1962_v30 = vsub.f32 %v1951_v24, %v1960_v29 }
 0xa19   : > { %v1965_v31 = vmul.f32 1.442695, %v1962_v30  ;;  %v2751_v30 = vld [vmem:[%s3795_s22] ss:$0 sm:$0xff] }
 0xa1a   : > { %v2054_v32 = vpop.permute.xlu1 %2053 }
 0xa1b   : > { %3082 = vpow2.f32 %v1965_v31  ;;  %2915 = vmatpush3.msra.mxu1 %v2054_v32  ;;  %v2752_v32 = vld [vmem:[%s643_s3] ss:$0 sm:$0xff] }
 0xa1c   : > { %2930 = vmatprep.subr.mxu1 %v2302_v20 }
 0xa1e   : > { %v2132_v53 = vpop.permute.xlu1 %2131 }
 0xa1f   : > { %v2153_v56 = vsel %vm813_vm3, %v3564_v10, %v2132_v53  ;;  %v2748_v10 = vld [vmem:[%s3794_s0] ss:$0 sm:$0xff] }
 0xa22   : > { %v2134_v54 = vpop.permute.xlu1 %2133 }
 0xa23   : > { %v2154_v61 = vsel %vm813_vm3, %v3566_v12, %v2134_v54 }
 0xa24   : > { %v3081_v39 = vpop.eup %3080 }
 0xa25   : > { %v1967_v33 = vsel %vm813_vm3, %v3081_v39, 0.0 }
 0xa26   : > { %1968 = vadd.xlane.f32.xlu0 %v1967_v33  ;;  %v2142_v57 = vpop.permute.xlu1 %2141 }
 0xa27   : > { %v2157_v62 = vsel %vm2155_vm5, %v2154_v61, %v2142_v57 }
 0xa28   : > { %v3083_v34 = vpop.eup %3082 }
 0xa29   : > { %v1970_v35 = vsel %vm813_vm3, %v3083_v34, 0.0 }
 0xa2a   : > { %1971 = vadd.xlane.f32.xlu0 %v1970_v35 }
 0xa40   : > { %1977 = vrot.lane.b32.xlu0 %v3520_v41, %s3250_s25  ;;  %v2162_v41 = vld [vmem:[%s3449_s13 + $0x8] sm:$0xff] }
 0xa44   : > { %2139 = vrot.lane.b32.xlu0 %v1719_v17, %s3252_s12 }
 0xaaf   : > { %v1969_v37 = vpop.xlane.xlu0 %1968 }
 0xab0   : > { %3084 = vrcp.f32 %v1969_v37 }
 0xab3   : > { %v1972_v38 = vpop.xlane.xlu0 %1971 }
 0xab4   : > { %3086 = vrcp.f32 %v1972_v38 }
 0xab7   : > { %v1978_v40 = vpop.permute.xlu0 %1977 }
 0xab8   : > { %2910 = vmatpush3.msra.mxu0 %v1978_v40  ;;  %v2408_v40 = vld [vmem:[%s3480_s30 + $0x38] sm:$0xff] }
 0xab9   : > { %2919 = vmatprep.subr.mxu0 %v2164_v46 }
 0xabb   : > { %v2140_v55 = vpop.permute.xlu0 %2139 }
 0xabc   : > { %v2156_v58 = vsel %vm2155_vm5, %v2153_v56, %v2140_v55 }
 0xabd   : > { %v3085_v42 = vpop.eup %3084 }
 0xabe   : > { %v1975_v43 = vmul.f32 %v3085_v42, %v3081_v39  ;;  %v2407_v42 = vld [vmem:[%s3480_s30 + $0x30] sm:$0xff] }
 0xac0   : > { %2912 = vmatmul.mubr.msk.f32.vlgmr.msra.gmra.mxu0 %vm813_vm3, %v1975_v43  ;;  %v2406_v43 = vld [vmem:[%s3480_s30 + $0x28] sm:$0xff] }
 0xac1   : > { %v3087_v44 = vpop.eup %3086  ;;  %2920 = vmatpush3.msra.mxu0 %v2164_v46  ;;  %v2403_v46 = vld [vmem:[%s3480_s30 + $0x10] sm:$0xff] }
 0xac2   : > { %v1976_v45 = vmul.f32 %v3087_v44, %v3083_v34  ;;  %2921 = vmatprep.subr.mxu0 %v2163_v47  ;;  %v2405_v44 = vld [vmem:[%s3480_s30 + $0x20] sm:$0xff] }
 0xac3   : > { %2922 = vmatpush3.msra.mxu0 %v2163_v47  ;;  %v2402_v47 = vld [vmem:[%s3480_s30 + $0x8] sm:$0xff] }
 0xac4   : > { %2917 = vmatmul.mubr.msk.f32.vlgmr.msra.gmra.mxu1 %vm813_vm3, %v1976_v45  ;;  %2923 = vmatprep.subr.mxu0 %v2162_v41  ;;  %v2404_v45 = vld [vmem:[%s3480_s30 + $0x18] sm:$0xff] }
 0xac5   : > { %2924 = vmatpush3.msra.mxu0 %v2162_v41  ;;  %2931 = vmatpush3.msra.mxu1 %v2302_v20  ;;  %v2401_v41 = vld [vmem:[%s3480_s30] sm:$0xff] }
 0xac6   : > { %2925 = vmatprep.subr.mxu0 %v2161_v48  ;;  %2932 = vmatprep.subr.mxu1 %v2301_v21 }
 0xac7   : > { %2926 = vmatpush3.msra.mxu0 %v2161_v48  ;;  %2933 = vmatpush3.msra.mxu1 %v2301_v21  ;;  %v2753_v48 = vld [vmem:[%s651_s5] ss:$0 sm:$0xff] }
 0xac8   : > { %2934 = vmatprep.subr.mxu1 %v2300_v22  ;;  %2941 = vmatprep.subr.mxu0 %v2408_v40 }
 0xac9   : > { %2935 = vmatpush3.msra.mxu1 %v2300_v22 }
 0xaca   : > { %2936 = vmatprep.subr.mxu1 %v2299_v23 }
 0xacb   : > { %2937 = vmatpush3.msra.mxu1 %v2299_v23 }
 0xb80   : > { %v2049_v49 = vpop.f32.mrf.mxu0 }
 0xb81   : > { %2147 = vrot.lane.b32.xlu0 %v2049_v49, %s3253_s27 }
 0xb82   : > { %v2913_v50 = vpop.f32.mrf.mxu0 }
 0xb84   : > { %v2125_v51 = vpop.f32.mrf.mxu1 }
 0xb85   : > { %2149 = vrot.lane.b32.xlu1 %v2125_v51, %s3253_s27 }
 0xb86   : > { %v2918_v52 = vpop.f32.mrf.mxu1 }
 0xbf3   : > { %v2148_v59 = vpop.permute.xlu0 %2147 }
 0xbf4   : > { %v2159_v60 = vsel %vm2158_vm4, %v2156_v58, %v2148_v59 }
 0xbf5   : > { %2927 = vmatprep.mubr.msk.f32.mxu0 %vm674_vm1, %v2159_v60 }
 0xbf7   : > { %v2150_v63 = vpop.permute.xlu1 %2149 }
 0xbf8   : > { %v2160_v0 = vsel %vm2158_vm4, %v2157_v62, %v2150_v63  ;;  %v2756_v63 = vld [vmem:[%s659_s26] ss:$0 sm:$0xff] }
 0xbf9   : > { %2928 = vmatmul.mubr.msk.f32.vlgmr.msra.gmra.mxu0 %vm674_vm1, %v2160_v0 }
 0xbfa   : > { %2942 = vmatpush3.msra.mxu0 %v2408_v40 }
 0xbfb   : > { %2943 = vmatprep.subr.mxu0 %v2407_v42 }
 0xbfc   : > { %2944 = vmatpush3.msra.mxu0 %v2407_v42 }
 0xbfd   : > { %2945 = vmatprep.subr.mxu0 %v2406_v43 }
 0xbfe   : > { %2946 = vmatpush3.msra.mxu0 %v2406_v43 }
 0xbff   : > { %2947 = vmatprep.subr.mxu0 %v2405_v44 }
 0xc00   : > { %2948 = vmatpush3.msra.mxu0 %v2405_v44 }
 0xc01   : > { %2949 = vmatprep.subr.mxu0 %v2404_v45 }
 0xc02   : > { %2950 = vmatpush3.msra.mxu0 %v2404_v45 }
 0xc03   : > { %2951 = vmatprep.subr.mxu0 %v2403_v46 }
 0xc04   : > { %2952 = vmatpush3.msra.mxu0 %v2403_v46 }
 0xc05   : > { %2953 = vmatprep.subr.mxu0 %v2402_v47 }
 0xc06   : > { %2954 = vmatpush3.msra.mxu0 %v2402_v47 }
 0xc07   : > { %2955 = vmatprep.subr.mxu0 %v2401_v41 }
 0xc08   : > { %2956 = vmatpush3.msra.mxu0 %v2401_v41 }
 0xcb9   : > { %v2929_v1 = vpop.f32.mrf.mxu0 }
 0xcba   : > { %v2250_v4 = vadd.f32 %v2929_v1, %v2748_v10 }
 0xcbb   : > { %v2244_v5 = vpop.f32.mrf.mxu0 }
 0xcbc   : > { %v3656_v6 = vadd.f32 %v2250_v4, %v3485_v3  ;;  %v2245_v7 = vadd.f32 %v2748_v10, %v2244_v5 }
 0xcbe   : > { %v3659_v8 = vadd.f32 %v2245_v7, %v3483_v2  ;;  %v2260_v12 = vsel %vm674_vm1, %v3656_v6, 0.0 }
 0xcbf   : > { %2261 = vadd.xlane.f32.xlu1 %v2260_v12 }
 0xcc0   : > { %v2257_v9 = vsel %vm674_vm1, %v3659_v8, 0.0 }
 0xcc1   : > { %2258 = vadd.xlane.f32.xlu0 %v2257_v9 }
 0xd48   : > { %v2262_v11 = vpop.xlane.xlu1 %2261 }
 0xd49   : > { %v2264_v13 = vmul.f32 0.03125, %v2262_v11 }
 0xd4a   : > { %v2259_v14 = vpop.xlane.xlu0 %2258 }
 0xd4b   : > { %v2263_v3 = vmul.f32 0.03125, %v2259_v14  ;;  %v2266_v15 = vsub.f32 %v3656_v6, %v2264_v13 }
 0xd4d   : > { %v2265_v2 = vsub.f32 %v3659_v8, %v2263_v3  ;;  %v2268_v18 = vmul.f32 %v2266_v15, %v2266_v15 }
 0xd4f   : > { %v2267_v16 = vmul.f32 %v2265_v2, %v2265_v2  ;;  %v2272_v19 = vsel %vm674_vm1, %v2268_v18, 0.0 }
 0xd51   : > { %v2269_v17 = vsel %vm674_vm1, %v2267_v16, 0.0 }
 0xd52   : > { %2270 = vadd.xlane.f32.xlu0 %v2269_v17 }
 0xd56   : > { %2273 = vadd.xlane.f32.xlu0 %v2272_v19 }
 0xddb   : > { %v2271_v24 = vpop.xlane.xlu0 %2270 }
 0xddc   : > { %v2275_v25 = vmul.f32 0.03125, %v2271_v24 }
 0xdde   : > { %v2277_v26 = vadd.f32 1e-05, %v2275_v25 }
 0xddf   : > { %v2274_v36 = vpop.xlane.xlu0 %2273 }
 0xde0   : > { %3088 = vrsqrt.f32 %v2277_v26  ;;  %v2276_v27 = vmul.f32 0.03125, %v2274_v36 }
 0xde2   : > { %v2278_v28 = vadd.f32 1e-05, %v2276_v27 }
 0xde4   : > { %3090 = vrsqrt.f32 %v2278_v28 }
 0xded   : > { %v3089_v29 = vpop.eup %3088 }
 0xdee   : > { %v2281_v31 = vmul.f32 %v3089_v29, %v2265_v2 }
 0xdf0   : > { %v2289_v39 = vmul.f32 %v2751_v30, %v2281_v31 }
 0xdf1   : > { %v3091_v33 = vpop.eup %3090 }
 0xdf2   : > { %v2282_v34 = vmul.f32 %v3091_v33, %v2266_v15  ;;  %v2297_v35 = vadd.f32 %v2752_v32, %v2289_v39 }
 0xdf4   : > { %v2290_v37 = vmul.f32 %v2751_v30, %v2282_v34  ;;  %2938 = vmatprep.mubr.msk.f32.mxu1 %vm674_vm1, %v2297_v35 }
 0xdf6   : > { %v2298_v38 = vadd.f32 %v2752_v32, %v2290_v37 }
 0xdf8   : > { %2939 = vmatmul.mubr.msk.f32.vlgmr.msra.gmra.mxu1 %vm674_vm1, %v2298_v38 }
 0xeb8   : > { %v2940_v49 = vpop.f32.mrf.mxu1 }
 0xeb9   : > { %v2388_v50 = vadd.f32 %v2940_v49, %v2753_v48 }
 0xeba   : > { %v2382_v51 = vpop.f32.mrf.mxu1 }
 0xebb   : > { %v2394_v52 = vmul.f32 0.70710677, %v2388_v50  ;;  %v2383_v53 = vadd.f32 %v2753_v48, %v2382_v51  ;;  %v2392_v60 = vmul.f32 0.5, %v2388_v50 }
 0xebd   : > { %3092 = verf.f32 %v2394_v52  ;;  %v2393_v54 = vmul.f32 0.70710677, %v2383_v53  ;;  %v2391_v58 = vmul.f32 0.5, %v2383_v53 }
 0xebf   : > { %3094 = verf.f32 %v2393_v54 }
 0xeca   : > { %v3093_v55 = vpop.eup %3092 }
 0xecb   : > { %v2398_v57 = vadd.f32 1.0, %v3093_v55 }
 0xecc   : > { %v3095_v56 = vpop.eup %3094 }
 0xecd   : > { %v2397_v59 = vadd.f32 1.0, %v3095_v56  ;;  %v2400_v62 = vmul.f32 %v2398_v57, %v2392_v60 }
 0xecf   : > { %v2399_v61 = vmul.f32 %v2397_v59, %v2391_v58 }
 0xed1   : > { %2957 = vmatprep.mubr.msk.f32.mxu0 %vm2416_vm6, %v2399_v61 }
 0xed2   : > { %2958 = vmatmul.mubr.msk.f32.vlgmr.msra.gmra.mxu0 %vm2416_vm6, %v2400_v62 }
 0xf92   : > { %v2959_v0 = vpop.f32.mrf.mxu0 }
 0xf93   : > { %v2495_v10 = vadd.f32 %v2959_v0, %v2756_v63 }
 0xf94   : > { %v2489_v1 = vpop.f32.mrf.mxu0 }
 0xf95   : > { %v2499_v4 = vadd.f32 %v2495_v10, %v3656_v6  ;;  %v2490_v5 = vadd.f32 %v2756_v63, %v2489_v1  ;;  %2505 = sbr.rel (%p2759_p4) target bundleno = 3995 (0xf9b), region = 88 }
 0xf97   : > { %2501 = vst.msk [vmem:[#allocation2 + $0x8] sm:$0xff] %vm674_vm1, %v2499_v4  ;;  %v2498_v7 = vadd.f32 %v2490_v5, %v3659_v8 }
 0xf99   : > { %2500 = vst.msk [vmem:[#allocation2] sm:$0xff] %vm674_vm1, %v2498_v7 }
 0xf9a   : > { %2506 = vst.msk [vmem:[#allocation8] sm:$0xff] %vm674_vm1, %v2498_v7  ;;  %2507 = vst.msk [vmem:[#allocation8 + $0x8] sm:$0xff] %vm674_vm1, %v2499_v4 }
 0xf9b PF: > { %s3798_s26 = sld [smem:[#allocation15_spill]]  ;;  %s3254_s20 = smov [#allocation8]  }
 0xf9c   : > { %s2517_s15 = sshll.u32 %s3254_s20, 4  ;;  %s2518_s15 = int_to_ptr.vmem [resolvable:$true] %s2517_s15 }
 0xf9d   : > { %s3150_s21 = scalar_lea.vmem %s2518_s15, 256  ;;  %p3157_p13 = scmp.lt.s32.totalorder %s2518_s15, %s2518_s15 }
 0xf9e   : > { %p3151_p10 = scmp.ne.s32.totalorder %s2518_s15, %s3150_s21  ;;  %p3158_p0 = scmp.lt.s32.totalorder %s3150_s21, %s3150_s21 }
 0xfa0   : > { %p3159_p2 = por %p3158_p0, %p3157_p13 }
 0xfa1   : > { %s3799_s17 = sadd.s32 4294967295, %s3798_s26  }
 0xfa2   : > { %p3712_p9 = scmp.eq.s32.totalorder %s3799_s17, 1 }
 0xfa4   : > { %p3152_p7 = pnand %p3151_p10, %p3712_p9 }
 0xfa6   : > { %p3153_p12 = pneg %p3152_p7 }
 0xfa8   : > { %p3160_p3 = pnand %p3159_p2, %p3153_p12 }
 0xfaa   : > { %3163 = shalt.err (!%p3160_p3)
}
 0xfab   : > { %s3255_s28 = smov 128   ;;  %s3801_s27 = sld [smem:[#allocation25_spill]] }
 0xfb1   : > { %2967 = dma.vmem_to_hbm [thread:$0]  (%p3712_p9), %s2518_s15, 256, %s3801_s27, [#allocation5], %s3255_s28, %s3255_s28, %s3251_s1  }
 0xfb2   : > { %3207 = dma.done.wait (%p3712_p9), [#allocation5], 256  }
 0xfb3   : > { %3209 = vsyncadd (%p3712_p9), [#allocation5], 4294967040 }
 0xfb4 PF: > { %s3802_s13 = sld [smem:[#allocation15_spill]] }
 0xfb5   : > { %s3803_s25 = sld [smem:[#allocation12_spill]] }
 0xfb6   : > { %s3804_s26 = sld [smem:[#allocation13_spill]] }
 0xfb7   : > { %s3805_s27 = sld [smem:[#allocation17_spill]] }
 0xfb8   : > { %s3806_s28 = sld [smem:[#allocation14_spill]] }
 0xfb9   : > { %s3807_s29 = sld [smem:[#allocation16_spill]] }
 0xfba   : > { %s28_s30 = sadd.s32 1, %s3802_s13  }
 0xfbb   : > { %p25_p6 = scmp.ge.s32.totalorder %s28_s30, 4  }
 0xfbd   :  { %27 = sbr.rel (!%p25_p6) target bundleno = 15 (0xf), region = 157 }
 0xfc2   :  { %2533 = vsyncpa [#allocation4], 1 }
 0xfc3   :  { %2535 = vsyncpa [#allocation4 + $0x1], 1 }
 0xfc4   :  { %2536 = vsyncpa [#allocation7], 1 }
 0xfc5   :  { %2538 = vsyncpa [#allocation7 + $0x1], 1 }
 0xfc6   :  { %2539 = vsyncpa [#allocation5], 1 }
 0xfc7   :  { %2541 = vsyncpa [#allocation5 + $0x1], 1 }

</bundles_post_ra>
